<compile_context>
chip_gen: v5e
topology: v5e:2x2
jax: 0.10.0
libtpu: 0.0.40
codegen_flags: <defaults>
</compile_context>

<pallas_src>
import jax
import jax.numpy as jnp
from jax.experimental import pallas as pl
from jax.experimental.pallas import tpu as pltpu


def discriminator_kernel(x_ref, w1_ref, b1_ref, w2_ref, b2_ref, w3_ref, b3_ref,
                         o_ref):
    # x tile: (TB, D) bf16 (cast in the wrapper -> half the activation DMA bytes)
    x = x_ref[...]

    # Layer 1: Linear(D, 512) + LeakyReLU(0.2). bf16 MXU inputs, f32 accumulate.
    h1 = jnp.dot(x, w1_ref[...], preferred_element_type=jnp.float32) + b1_ref[...]
    h1 = jnp.where(h1 > 0, h1, 0.2 * h1)                       # f32 on the VPU

    # Layer 2: Linear(512, 256) + LeakyReLU(0.2).
    h2 = jnp.dot(h1.astype(jnp.bfloat16), w2_ref[...],
                 preferred_element_type=jnp.float32) + b2_ref[...]
    h2 = jnp.where(h2 > 0, h2, 0.2 * h2)

    # Layer 3: Linear(256, 1) + Sigmoid.
    # Instead of the degenerate (TB,256)@(256,1) matmul (N=1 wastes the MXU
    # output width and would force a masked single-lane store), contract
    # w3_row (1,256) against h2 (TB,256) over the feature axis -> (1, TB):
    # batch lands on lanes, so the output store is a single unmasked vst row.
    z = jax.lax.dot_general(
        w3_ref[...], h2.astype(jnp.bfloat16),
        dimension_numbers=(((1,), (1,)), ((), ())),
        preferred_element_type=jnp.float32)                    # (1, TB) f32
    o_ref[...] = jax.nn.sigmoid(z + b3_ref[0, 0])


def discriminator_forward(x, params, *, block_b=None):
    """x: (B, D) f32.  params: (w1,b1,w2,b2,w3,b3) f32.  Returns (B, 1) f32."""
    w1, b1, w2, b2, w3, b3 = params
    B, D = x.shape

    # Batch tile: >=128 for MXU M-occupancy, 256 on larger batches (v6e/v7x MXU).
    if block_b is None:
        block_b = 128 if B <= 128 else 256
    n_tiles = pl.cdiv(B, block_b)
    b_pad = n_tiles * block_b

    # bf16 MXU operands (f32 accumulation happens inside the kernel).
    x_p = jnp.zeros((b_pad, D), jnp.bfloat16).at[:B].set(x.astype(jnp.bfloat16))
    w1b = w1.astype(jnp.bfloat16)
    w2b = w2.astype(jnp.bfloat16)
    w3_row = w3.reshape(1, -1).astype(jnp.bfloat16)            # (1, 256)
    b3_s = b3.reshape(1, 1).astype(jnp.float32)                # scalar -> SMEM

    def const_spec(a):
        nd = a.ndim
        return pl.BlockSpec(a.shape, lambda i, _nd=nd: (0,) * _nd)

    out = pl.pallas_call(
        discriminator_kernel,
        grid=(n_tiles,),
        out_shape=jax.ShapeDtypeStruct((1, b_pad), jnp.float32),
        in_specs=[
            pl.BlockSpec((block_b, D), lambda i: (i, 0)),      # x tile (pipelined)
            const_spec(w1b),                                   # weights: resident
            const_spec(b1),
            const_spec(w2b),
            const_spec(b2),
            const_spec(w3_row),
            pl.BlockSpec(memory_space=pltpu.MemorySpace.SMEM),  # b3 scalar
        ],
        # Lane-dense output slab: (1, B_pad), one (1, TB) row block per grid step.
        out_specs=pl.BlockSpec((1, block_b), lambda i: (0, i)),
        compiler_params=pltpu.CompilerParams(
            dimension_semantics=("parallel",),                 # megacore on v7x
            vmem_limit_bytes=32 * 1024 * 1024),
    )(x_p, w1b, b1, w2b, b2, w3_row, b3_s)

    # (1, B_pad) lane-major slab -> (B, 1), dropping batch padding.
    return out.reshape(-1)[:B].reshape(B, 1)


def init_params(key, input_dim):
    """Deterministic PyTorch-style (uniform +/- 1/sqrt(fan_in)) init, f32."""
    dims = [(input_dim, 512), (512, 256), (256, 1)]
    params = []
    for (fan_in, fan_out) in dims:
        key, kw, kb = jax.random.split(key, 3)
        bound = 1.0 / jnp.sqrt(jnp.float32(fan_in))
        w = jax.random.uniform(kw, (fan_in, fan_out), jnp.float32, -bound, bound)
        b = jax.random.uniform(kb, (1, fan_out), jnp.float32, -bound, bound)
        params += [w, b]
    return tuple(params)


def reference_forward(x, params):
    """Pure-JAX reference mirroring the kernel's bf16-input / f32-accumulate math."""
    w1, b1, w2, b2, w3, b3 = params
    bf = jnp.bfloat16
    h1 = jnp.dot(x.astype(bf), w1.astype(bf),
                 preferred_element_type=jnp.float32) + b1
    h1 = jnp.where(h1 > 0, h1, 0.2 * h1)
    h2 = jnp.dot(h1.astype(bf), w2.astype(bf),
                 preferred_element_type=jnp.float32) + b2
    h2 = jnp.where(h2 > 0, h2, 0.2 * h2)
    z = jnp.dot(h2.astype(bf), w3.astype(bf),
                preferred_element_type=jnp.float32) + b3
    return jax.nn.sigmoid(z)


if __name__ == "__main__":
    key = jax.random.PRNGKey(0)
    key, kx = jax.random.split(key)

    batch = 8
    input_dim = 32

    x = jax.random.normal(kx, (batch, input_dim), jnp.float32)
    params = init_params(key, input_dim)

    out = jax.block_until_ready(discriminator_forward(x, params))
    ref = reference_forward(x, params)

    assert out.shape == (batch, 1), out.shape
    assert jnp.allclose(out, ref, atol=1e-4, rtol=1e-4), (
        "mismatch vs reference, max abs diff = "
        f"{float(jnp.max(jnp.abs(out - ref)))}")

    print("KERNEL_OK")
</pallas_src>

<mosaic_0001>
module attributes {stable_mosaic.version = 11 : i64} {
  func.func @discriminator_kernel(%arg0: i32, %arg1: memref<128x32xbf16, #tpu.memory_space<vmem>>, %arg2: memref<32x512xbf16, #tpu.memory_space<vmem>>, %arg3: memref<1x512xf32, #tpu.memory_space<vmem>>, %arg4: memref<512x256xbf16, #tpu.memory_space<vmem>>, %arg5: memref<1x256xf32, #tpu.memory_space<vmem>>, %arg6: memref<1x256xbf16, #tpu.memory_space<vmem>>, %arg7: memref<1x1xf32, #tpu.memory_space<smem>>, %arg8: memref<1x128xf32, #tpu.memory_space<vmem>>) attributes {dimension_semantics = [#tpu.dimension_semantics<parallel>], iteration_bounds = array<i64: 1>, scalar_prefetch = 0 : i64, scratch_operands = 0 : i64, tpu.core_type = #tpu.core_type<tc>, window_params = [{transform_indices = @transform_0, window_bounds = array<i64: 128, 32>}, {pipeline_mode = #tpu.pipeline_mode<synchronous>, transform_indices = @transform_1, window_bounds = array<i64: 32, 512>}, {pipeline_mode = #tpu.pipeline_mode<synchronous>, transform_indices = @transform_2, window_bounds = array<i64: 1, 512>}, {pipeline_mode = #tpu.pipeline_mode<synchronous>, transform_indices = @transform_3, window_bounds = array<i64: 512, 256>}, {pipeline_mode = #tpu.pipeline_mode<synchronous>, transform_indices = @transform_4, window_bounds = array<i64: 1, 256>}, {pipeline_mode = #tpu.pipeline_mode<synchronous>, transform_indices = @transform_5, window_bounds = array<i64: 1, 256>}, {transform_indices = @transform_6, window_bounds = array<i64: 1, 1>}, {transform_indices = @transform_7, window_bounds = array<i64: 1, 128>}]} {
    %c0 = arith.constant 0 : index
    %c0_0 = arith.constant 0 : index
    %0 = vector.load %arg1[%c0, %c0_0] : memref<128x32xbf16, #tpu.memory_space<vmem>>, vector<128x32xbf16>
    %c0_1 = arith.constant 0 : index
    %c0_2 = arith.constant 0 : index
    %1 = vector.load %arg2[%c0_1, %c0_2] : memref<32x512xbf16, #tpu.memory_space<vmem>>, vector<32x512xbf16>
    %cst = arith.constant dense<0.000000e+00> : vector<128x512xf32>
    %2 = tpu.matmul %0, %1, %cst {dimension_numbers = #tpu.dot_dimension_numbers<[1], [0], [0], [1], [0, 0, 1, 1], [], []>} : vector<128x32xbf16>, vector<32x512xbf16>, vector<128x512xf32> -> vector<128x512xf32>
    %c0_3 = arith.constant 0 : index
    %c0_4 = arith.constant 0 : index
    %3 = vector.load %arg3[%c0_3, %c0_4] : memref<1x512xf32, #tpu.memory_space<vmem>>, vector<1x512xf32>
    %4 = vector.broadcast %3 : vector<1x512xf32> to vector<128x512xf32>
    %5 = arith.addf %2, %4 : vector<128x512xf32>
    %cst_5 = arith.constant 0.000000e+00 : f32
    %6 = vector.broadcast %cst_5 : f32 to vector<128x512xf32>
    %7 = arith.cmpf ogt, %5, %6 : vector<128x512xf32>
    %cst_6 = arith.constant 2.000000e-01 : f32
    %8 = vector.broadcast %cst_6 : f32 to vector<128x512xf32>
    %9 = arith.mulf %8, %5 : vector<128x512xf32>
    %10 = arith.select %7, %5, %9 : vector<128x512xi1>, vector<128x512xf32>
    %11 = arith.truncf %10 : vector<128x512xf32> to vector<128x512xbf16>
    %c0_7 = arith.constant 0 : index
    %c0_8 = arith.constant 0 : index
    %12 = vector.load %arg4[%c0_7, %c0_8] : memref<512x256xbf16, #tpu.memory_space<vmem>>, vector<512x256xbf16>
    %cst_9 = arith.constant dense<0.000000e+00> : vector<128x256xf32>
    %13 = tpu.matmul %11, %12, %cst_9 {dimension_numbers = #tpu.dot_dimension_numbers<[1], [0], [0], [1], [0, 0, 1, 1], [], []>} : vector<128x512xbf16>, vector<512x256xbf16>, vector<128x256xf32> -> vector<128x256xf32>
    %c0_10 = arith.constant 0 : index
    %c0_11 = arith.constant 0 : index
    %14 = vector.load %arg5[%c0_10, %c0_11] : memref<1x256xf32, #tpu.memory_space<vmem>>, vector<1x256xf32>
    %15 = vector.broadcast %14 : vector<1x256xf32> to vector<128x256xf32>
    %16 = arith.addf %13, %15 : vector<128x256xf32>
    %cst_12 = arith.constant 0.000000e+00 : f32
    %17 = vector.broadcast %cst_12 : f32 to vector<128x256xf32>
    %18 = arith.cmpf ogt, %16, %17 : vector<128x256xf32>
    %cst_13 = arith.constant 2.000000e-01 : f32
    %19 = vector.broadcast %cst_13 : f32 to vector<128x256xf32>
    %20 = arith.mulf %19, %16 : vector<128x256xf32>
    %21 = arith.select %18, %16, %20 : vector<128x256xi1>, vector<128x256xf32>
    %c0_14 = arith.constant 0 : index
    %c0_15 = arith.constant 0 : index
    %22 = vector.load %arg6[%c0_14, %c0_15] : memref<1x256xbf16, #tpu.memory_space<vmem>>, vector<1x256xbf16>
    %23 = arith.truncf %21 : vector<128x256xf32> to vector<128x256xbf16>
    %cst_16 = arith.constant dense<0.000000e+00> : vector<1x128xf32>
    %24 = tpu.matmul %22, %23, %cst_16 {dimension_numbers = #tpu.dot_dimension_numbers<[1], [1], [0], [0], [0, 0, 1, 0], [], []>} : vector<1x256xbf16>, vector<128x256xbf16>, vector<1x128xf32> -> vector<1x128xf32>
    %c0_17 = arith.constant 0 : index
    %c0_18 = arith.constant 0 : index
    %25 = memref.load %arg7[%c0_17, %c0_18] : memref<1x1xf32, #tpu.memory_space<smem>>
    %26 = vector.broadcast %25 : f32 to vector<1x128xf32>
    %27 = arith.addf %24, %26 : vector<1x128xf32>
    %28 = arith.negf %27 : vector<1x128xf32>
    %29 = math.exp %28 : vector<1x128xf32>
    %cst_19 = arith.constant 1.000000e+00 : f32
    %30 = vector.broadcast %cst_19 : f32 to vector<1x128xf32>
    %31 = arith.addf %30, %29 : vector<1x128xf32>
    %32 = arith.divf %30, %31 : vector<1x128xf32>
    %c0_20 = arith.constant 0 : index
    %c0_21 = arith.constant 0 : index
    %33 = vector.load %arg8[%c0_20, %c0_21] : memref<1x128xf32, #tpu.memory_space<vmem>>, vector<1x128xf32>
    tpu.vector_store %arg8[%c0_20, %c0_21], %32 {strides = array<i32>} : memref<1x128xf32, #tpu.memory_space<vmem>>, vector<1x128xf32>,
    return
  }
  func.func @transform_0(%arg0: i32) -> (i32, i32) {
    %c0_i32 = arith.constant 0 : i32
    %c0_i32_0 = arith.constant 0 : i32
    return %arg0, %c0_i32 : i32, i32
  }
  func.func @transform_1(%arg0: i32) -> (i32, i32) {
    %c0_i32 = arith.constant 0 : i32
    %c0_i32_0 = arith.constant 0 : i32
    %c0_i32_1 = arith.constant 0 : i32
    return %c0_i32, %c0_i32_0 : i32, i32
  }
  func.func @transform_2(%arg0: i32) -> (i32, i32) {
    %c0_i32 = arith.constant 0 : i32
    %c0_i32_0 = arith.constant 0 : i32
    %c0_i32_1 = arith.constant 0 : i32
    return %c0_i32, %c0_i32_0 : i32, i32
  }
  func.func @transform_3(%arg0: i32) -> (i32, i32) {
    %c0_i32 = arith.constant 0 : i32
    %c0_i32_0 = arith.constant 0 : i32
    %c0_i32_1 = arith.constant 0 : i32
    return %c0_i32, %c0_i32_0 : i32, i32
  }
  func.func @transform_4(%arg0: i32) -> (i32, i32) {
    %c0_i32 = arith.constant 0 : i32
    %c0_i32_0 = arith.constant 0 : i32
    %c0_i32_1 = arith.constant 0 : i32
    return %c0_i32, %c0_i32_0 : i32, i32
  }
  func.func @transform_5(%arg0: i32) -> (i32, i32) {
    %c0_i32 = arith.constant 0 : i32
    %c0_i32_0 = arith.constant 0 : i32
    %c0_i32_1 = arith.constant 0 : i32
    return %c0_i32, %c0_i32_0 : i32, i32
  }
  func.func @transform_6(%arg0: i32) -> (i32, i32) {
    %c0_i32 = arith.constant 0 : i32
    %c0_i32_0 = arith.constant 0 : i32
    %c0_i32_1 = arith.constant 0 : i32
    return %c0_i32, %c0_i32_0 : i32, i32
  }
  func.func @transform_7(%arg0: i32) -> (i32, i32) {
    %c0_i32 = arith.constant 0 : i32
    %c0_i32_0 = arith.constant 0 : i32
    return %c0_i32, %arg0 : i32, i32
  }
}

</mosaic_0001>

<bundles_post_ra>
// kernel: tpu_custom_call.1
= control target key start
LH: loop header
LB: loop body
LE: loop exit
PB: predicated region body
PF: predicated region fallthrough
CT: control target
= control target key end

     0   :  { %13 = vsyncpa [#allocation4], 0  ;;  %s2607_s0 = inlined_call_operand.vmem [shape: bf16[128,32], index: 0, kind: input, shape index: {}]   ;;  %s2608_s1 = inlined_call_operand.vmem [shape: bf16[32,512], index: 1, kind: input, shape index: {}]   ;;  %s2609_s2 = inlined_call_operand.vmem [shape: f32[1,512], index: 2, kind: input, shape index: {}]   ;;  %s2610_s3 = inlined_call_operand.hbm [shape: bf16[512,256], index: 3, kind: input, shape index: {}]   ;;  %s2611_s4 = inlined_call_operand.vmem [shape: f32[1,256], index: 4, kind: input, shape index: {}]   ;;  %s2612_s5 = inlined_call_operand.vmem [shape: bf16[1,256], index: 5, kind: input, shape index: {}]   ;;  %s2613_s6 = inlined_call_operand.<no memory space> [shape: f32[1,1], index: 6, kind: input, shape index: {}]   ;;  %s2614_s7 = inlined_call_operand.hbm [shape: f32[1,128], index: 7, kind: output, shape index: {}]  }
   0x1   :  { %14 = vsyncpa [#allocation5], 0  ;;  %s25_s26 = sshll.u32 %s2610_s3, 4  ;;  %s2063_s27 = smov [#allocation3]   ;;  %s26_s26 = int_to_ptr.hbm [resolvable:$true] %s25_s26 }
   0x2   :  { %s27_s28 = sshll.u32 %s2063_s27, 4  ;;  %s2064_s29 = smov 128   ;;  %s28_s28 = int_to_ptr.vmem [resolvable:$true] %s27_s28 }
   0x3   :  { %s2065_s30 = smov 8  }
   0x4   :  { %33 = dma.hbm_to_vmem [thread:$0]  %s26_s26, 8192, %s28_s28, [#allocation4], %s2064_s29, %s2064_s29, %s2065_s30  }
   0x5   :  { %2059 = dma.done.wait [#allocation4], 8192  }
   0x6   :  { %2060 = vsyncadd [#allocation4], 4294959104  ;;  %v1620_v0 = vld [vmem:[%s2608_s1 + $0x20] sm:$0xf]  ;;  %v1937_v1 = vld [vmem:[%s2608_s1 + $0x2c] sm:$0xf0] }
   0x7   :  { %v1935_v2 = vld [vmem:[%s2608_s1 + $0x24] sm:$0xf]  ;;  %v1621_v3 = vor.u32 %v1937_v1, %v1620_v0  ;;  %v1622_v4 = vld [vmem:[%s2608_s1 + $0x30] sm:$0xf0]  ;;  %v1628_v5 = vld [vmem:[%s2608_s1 + $0x28] sm:$0xf] }
   0x8   :  { %v1938_v6 = vld [vmem:[%s2608_s1 + $0x34] sm:$0xf0]  ;;  %v1625_v7 = vor.u32 %v1935_v2, %v1622_v4  ;;  %v1936_v9 = vld [vmem:[%s2608_s1 + $0x2c] sm:$0xf]  ;;  %v1630_v10 = vld [vmem:[%s2608_s1 + $0x38] sm:$0xf0] }
   0x9   :  { %v1629_v8 = vor.u32 %v1938_v6, %v1628_v5  ;;  %v1604_v11 = vld [vmem:[%s2608_s1] sm:$0xf]  ;;  %190 = vmatpush.bf16.msra.mxu0 %v1621_v3  ;;  %v1633_v12 = vor.u32 %v1936_v9, %v1630_v10  ;;  %v1933_v13 = vld [vmem:[%s2608_s1 + $0xc] sm:$0xf0]  ;;  %v1931_v14 = vld [vmem:[%s2608_s1 + $0x4] sm:$0xf] }
   0xa   :  { %v1606_v15 = vld [vmem:[%s2608_s1 + $0x10] sm:$0xf0]  ;;  %239 = vmatpush.bf16.msra.mxu1 %v1625_v7  ;;  %v1605_v16 = vor.u32 %v1933_v13, %v1604_v11  ;;  %v1612_v18 = vld [vmem:[%s2608_s1 + $0x8] sm:$0xf]  ;;  %v1934_v19 = vld [vmem:[%s2608_s1 + $0x14] sm:$0xf0] }
   0xb   :  { %288 = vmatpush.bf16.msra.mxu2 %v1629_v8  ;;  %v1609_v17 = vor.u32 %v1931_v14, %v1606_v15  ;;  %v1932_v20 = vld [vmem:[%s2608_s1 + $0xc] sm:$0xf]  ;;  %337 = vmatpush.bf16.msra.mxu3 %v1633_v12  ;;  %v1613_v21 = vor.u32 %v1934_v19, %v1612_v18  ;;  %v1614_v22 = vld [vmem:[%s2608_s1 + $0x18] sm:$0xf0]  ;;  %v1923_v24 = vld [vmem:[%s2607_s0] sm:$0xff]  ;;  %vm159_vm0 = vcmask 261120  }
   0xc   :  { %v1617_v23 = vor.u32 %v1932_v20, %v1614_v22  ;;  %v1924_v25 = vld [vmem:[%s2607_s0 + $0x8] sm:$0xff]  ;;  %v1925_v26 = vld [vmem:[%s2607_s0 + $0x10] sm:$0xff]  ;;  %v1926_v27 = vld [vmem:[%s2607_s0 + $0x18] sm:$0xff]  ;;  %s2066_s11 = smov [#allocation6]   ;;  %s1560_s3 = sshll.u32 %s2614_s7, 4  ;;  %s1561_s3 = int_to_ptr.hbm [resolvable:$true] %s1560_s3 }
   0xd   :  { %191 = vmatpush.bf16.msra.mxu0 %v1605_v16  ;;  %v1852_v28 = vld [vmem:[#allocation3 + $0x170] sm:$0xf]  ;;  %v1986_v29 = vld [vmem:[#allocation3 + $0x174] sm:$0xf0]  ;;  %v1844_v41 = vld [vmem:[#allocation3 + $0x160] sm:$0xf] }
   0xe   :  { %240 = vmatpush.bf16.msra.mxu1 %v1609_v17  ;;  %v1724_v30 = vld [vmem:[#allocation3 + $0x70] sm:$0xf]  ;;  %v1853_v31 = vor.u32 %v1986_v29, %v1852_v28  ;;  %v1954_v32 = vld [vmem:[#allocation3 + $0x74] sm:$0xf0]  ;;  %v1984_v42 = vld [vmem:[#allocation3 + $0x164] sm:$0xf0] }
   0xf   :  { %289 = vmatpush.bf16.msra.mxu2 %v1613_v21  ;;  %338 = vmatpush.bf16.msra.mxu3 %v1617_v23  ;;  %v1916_v33 = vld [vmem:[#allocation3 + $0x1f0] sm:$0xf]  ;;  %v2002_v34 = vld [vmem:[#allocation3 + $0x1f4] sm:$0xf0]  ;;  %v1725_v35 = vor.u32 %v1954_v32, %v1724_v30  ;;  %v1716_v43 = vld [vmem:[#allocation3 + $0x60] sm:$0xf]  ;;  %v1845_v44 = vor.u32 %v1984_v42, %v1844_v41 }
  0x10   :  { %1634 = vmatmul.msk.bf16.vlgmr.msra.gmra.mxu0 %vm159_vm0, %v1923_v24  ;;  %v1917_v36 = vor.u32 %v2002_v34, %v1916_v33  ;;  %v1788_v37 = vld [vmem:[#allocation3 + $0xf0] sm:$0xf]  ;;  %v1970_v38 = vld [vmem:[#allocation3 + $0xf4] sm:$0xf0]  ;;  %v1952_v45 = vld [vmem:[#allocation3 + $0x64] sm:$0xf0] }
  0x11   :  { %1642 = vmatmul.msk.bf16.vlgmr.msra.gmra.mxu1 %vm159_vm0, %v1923_v24  ;;  %v1789_v39 = vor.u32 %v1970_v38, %v1788_v37  ;;  %994 = vmatpush.bf16.msrb.mxu0 %v1725_v35  ;;  %v1927_v40 = vld [vmem:[%s2607_s0 + $0x20] sm:$0xff]  ;;  %v1908_v46 = vld [vmem:[#allocation3 + $0x1e0] sm:$0xf]  ;;  %v2000_v47 = vld [vmem:[#allocation3 + $0x1e4] sm:$0xf0]  ;;  %v1717_v48 = vor.u32 %v1952_v45, %v1716_v43  ;;  %s1558_s12 = sshll.u32 %s2066_s11, 4  ;;  %s1559_s12 = int_to_ptr.vmem [resolvable:$true] %s1558_s12 }
  0x12   :  { %1650 = vmatmul.msk.bf16.vlgmr.msra.gmra.mxu2 %vm159_vm0, %v1923_v24  ;;  %1658 = vmatmul.msk.bf16.vlgmr.msra.gmra.mxu3 %vm159_vm0, %v1923_v24  ;;  %v1909_v49 = vor.u32 %v2000_v47, %v1908_v46  ;;  %v1780_v50 = vld [vmem:[#allocation3 + $0xe0] sm:$0xf]  ;;  %v1968_v51 = vld [vmem:[#allocation3 + $0xe4] sm:$0xf0]  ;;  %v1836_v54 = vld [vmem:[#allocation3 + $0x150] sm:$0xf] }
  0x13   :  { %1092 = vmatpush.bf16.msrb.mxu2 %v1853_v31  ;;  %1141 = vmatpush.bf16.msrb.mxu3 %v1917_v36  ;;  %v1781_v52 = vor.u32 %v1968_v51, %v1780_v50  ;;  %v1928_v53 = vld [vmem:[%s2607_s0 + $0x28] sm:$0xff]  ;;  %v1982_v55 = vld [vmem:[#allocation3 + $0x154] sm:$0xf0]  ;;  %v1708_v56 = vld [vmem:[#allocation3 + $0x50] sm:$0xf] }
  0x14   :  { %1043 = vmatpush.bf16.msrb.mxu1 %v1789_v39  ;;  %v1837_v57 = vor.u32 %v1982_v55, %v1836_v54  ;;  %v1950_v58 = vld [vmem:[#allocation3 + $0x54] sm:$0xf0]  ;;  %v1772_v59 = vld [vmem:[#allocation3 + $0xd0] sm:$0xf]  ;;  %v1700_v1 = vld [vmem:[#allocation3 + $0x40] sm:$0xf] }
  0x15   :  { %995 = vmatpush.bf16.msrb.mxu0 %v1717_v48  ;;  %v1966_v60 = vld [vmem:[#allocation3 + $0xd4] sm:$0xf0]  ;;  %v1709_v61 = vor.u32 %v1950_v58, %v1708_v56  ;;  %v1900_v63 = vld [vmem:[#allocation3 + $0x1d0] sm:$0xf]  ;;  %v1948_v3 = vld [vmem:[#allocation3 + $0x44] sm:$0xf0] }
  0x16   :  { %v1773_v62 = vor.u32 %v1966_v60, %v1772_v59  ;;  %v1998_v0 = vld [vmem:[#allocation3 + $0x1d4] sm:$0xf0]  ;;  %v1764_v4 = vld [vmem:[#allocation3 + $0xc0] sm:$0xf]  ;;  %v1964_v5 = vld [vmem:[#allocation3 + $0xc4] sm:$0xf0]  ;;  %v1701_v6 = vor.u32 %v1948_v3, %v1700_v1 }
  0x17   :  { %1093 = vmatpush.bf16.msrb.mxu2 %v1845_v44  ;;  %1142 = vmatpush.bf16.msrb.mxu3 %v1909_v49  ;;  %v1901_v2 = vor.u32 %v1998_v0, %v1900_v63  ;;  %v1765_v7 = vor.u32 %v1964_v5, %v1764_v4  ;;  %v1929_v8 = vld [vmem:[%s2607_s0 + $0x30] sm:$0xff]  ;;  %v1692_v9 = vld [vmem:[#allocation3 + $0x30] sm:$0xf]  ;;  %v1946_v10 = vld [vmem:[#allocation3 + $0x34] sm:$0xf0] }
  0x18   :  { %1044 = vmatpush.bf16.msrb.mxu1 %v1781_v52  ;;  %v1756_v11 = vld [vmem:[#allocation3 + $0xb0] sm:$0xf]  ;;  %v1693_v12 = vor.u32 %v1946_v10, %v1692_v9  ;;  %v1962_v13 = vld [vmem:[#allocation3 + $0xb4] sm:$0xf0]  ;;  %v1828_v15 = vld [vmem:[#allocation3 + $0x140] sm:$0xf] }
  0x19   :  { %996 = vmatpush.bf16.msrb.mxu0 %v1709_v61  ;;  %v1757_v14 = vor.u32 %v1962_v13, %v1756_v11  ;;  %v1980_v16 = vld [vmem:[#allocation3 + $0x144] sm:$0xf0]  ;;  %v1892_v17 = vld [vmem:[#allocation3 + $0x1c0] sm:$0xf]  ;;  %v1978_v28 = vld [vmem:[#allocation3 + $0x134] sm:$0xf0] }
  0x1a   :  { %v1829_v18 = vor.u32 %v1980_v16, %v1828_v15  ;;  %v1996_v19 = vld [vmem:[#allocation3 + $0x1c4] sm:$0xf0]  ;;  %v1684_v21 = vld [vmem:[#allocation3 + $0x20] sm:$0xf]  ;;  %v1884_v29 = vld [vmem:[#allocation3 + $0x1b0] sm:$0xf] }
  0x1b   :  { %1094 = vmatpush.bf16.msrb.mxu2 %v1837_v57  ;;  %1143 = vmatpush.bf16.msrb.mxu3 %v1901_v2  ;;  %v1893_v20 = vor.u32 %v1996_v19, %v1892_v17  ;;  %v1944_v22 = vld [vmem:[#allocation3 + $0x24] sm:$0xf0]  ;;  %v1748_v23 = vld [vmem:[#allocation3 + $0xa0] sm:$0xf]  ;;  %v1994_v31 = vld [vmem:[#allocation3 + $0x1b4] sm:$0xf0] }
  0x1c   :  { %1045 = vmatpush.bf16.msrb.mxu1 %v1773_v62  ;;  %v1685_v24 = vor.u32 %v1944_v22, %v1684_v21  ;;  %v1885_v32 = vor.u32 %v1994_v31, %v1884_v29  ;;  %v1676_v33 = vld [vmem:[#allocation3 + $0x10] sm:$0xf]  ;;  %v1942_v34 = vld [vmem:[#allocation3 + $0x14] sm:$0xf0]  ;;  %v1812_v39 = vld [vmem:[#allocation3 + $0x120] sm:$0xf] }
  0x1d   :  { %997 = vmatpush.bf16.msrb.mxu0 %v1701_v6  ;;  %v1740_v35 = vld [vmem:[#allocation3 + $0x90] sm:$0xf]  ;;  %v1677_v36 = vor.u32 %v1942_v34, %v1676_v33  ;;  %v1958_v37 = vld [vmem:[#allocation3 + $0x94] sm:$0xf0]  ;;  %v1876_v41 = vld [vmem:[#allocation3 + $0x1a0] sm:$0xf] }
  0x1e   :  { %v1741_v38 = vor.u32 %v1958_v37, %v1740_v35  ;;  %v1992_v43 = vld [vmem:[#allocation3 + $0x1a4] sm:$0xf0]  ;;  %v1668_v45 = vld [vmem:[#allocation3] sm:$0xf]  ;;  %v1804_v51 = vld [vmem:[#allocation3 + $0x110] sm:$0xf] }
  0x1f   :  { %1095 = vmatpush.bf16.msrb.mxu2 %v1829_v18  ;;  %1144 = vmatpush.bf16.msrb.mxu3 %v1893_v20  ;;  %v1877_v44 = vor.u32 %v1992_v43, %v1876_v41  ;;  %v1940_v46 = vld [vmem:[#allocation3 + $0x4] sm:$0xf0]  ;;  %v1732_v47 = vld [vmem:[#allocation3 + $0x80] sm:$0xf]  ;;  %v1974_v52 = vld [vmem:[#allocation3 + $0x114] sm:$0xf0] }
  0x20   :  { %1635 = vmatmul.msk.bf16.gmra.mxu0 %vm159_vm0, %v1924_v25  ;;  %1046 = vmatpush.bf16.msrb.mxu1 %v1765_v7  ;;  %v1669_v48 = vor.u32 %v1940_v46, %v1668_v45  ;;  %v1956_v49 = vld [vmem:[#allocation3 + $0x84] sm:$0xf0]  ;;  %v1930_v54 = vld [vmem:[%s2607_s0 + $0x38] sm:$0xff]  ;;  %v1805_v55 = vor.u32 %v1974_v52, %v1804_v51  ;;  %v1990_v56 = vld [vmem:[#allocation3 + $0x194] sm:$0xf0] }
  0x21   :  { %1643 = vmatmul.msk.bf16.gmra.mxu1 %vm159_vm0, %v1924_v25  ;;  %998 = vmatpush.bf16.msrb.mxu0 %v1693_v12  ;;  %v1733_v50 = vor.u32 %v1956_v49, %v1732_v47  ;;  %v1796_v58 = vld [vmem:[#allocation3 + $0x100] sm:$0xf]  ;;  %v1972_v59 = vld [vmem:[#allocation3 + $0x104] sm:$0xf0]  ;;  %v69_v0 = vld [vmem:[%s2609_s2] sm:$0xf] }
  0x22   :  { %1651 = vmatmul.msk.bf16.gmra.mxu2 %vm159_vm0, %v1924_v25  ;;  %1659 = vmatmul.msk.bf16.gmra.mxu3 %vm159_vm0, %v1924_v25  ;;  %v1960_v25 = vld [vmem:[#allocation3 + $0xa4] sm:$0xf0]  ;;  %v1860_v60 = vld [vmem:[#allocation3 + $0x180] sm:$0xf]  ;;  %v1797_v61 = vor.u32 %v1972_v59, %v1796_v58  ;;  %v2217_v2 = vperm.slane %v69_v0, 1  ;;  %v2219_v3 = vperm.slane %v69_v0, 0 }
  0x23   :  { %1145 = vmatpush.bf16.msrb.mxu3 %v1885_v32  ;;  %v1988_v62 = vld [vmem:[#allocation3 + $0x184] sm:$0xf0]  ;;  %v2223_v9 = vperm.slane %v69_v0, 2  ;;  %v2225_v13 = vperm.slane %v69_v0, 3 }
  0x24   :  { %1047 = vmatpush.bf16.msrb.mxu1 %v1757_v14  ;;  %v1861_v63 = vor.u32 %v1988_v62, %v1860_v60 }
  0x25   :  { %999 = vmatpush.bf16.msrb.mxu0 %v1685_v24 }
  0x27   :  { %1146 = vmatpush.bf16.msrb.mxu3 %v1877_v44 }
  0x29   :  { %1000 = vmatpush.bf16.msrb.mxu0 %v1677_v36 }
  0x2d   :  { %1001 = vmatpush.bf16.msrb.mxu0 %v1669_v48 }
  0x30   :  { %1636 = vmatmul.msk.bf16.gmra.mxu0 %vm159_vm0, %v1925_v26 }
  0x31   :  { %1644 = vmatmul.msk.bf16.gmra.mxu1 %vm159_vm0, %v1925_v26 }
  0x32   :  { %1652 = vmatmul.msk.bf16.gmra.mxu2 %vm159_vm0, %v1925_v26  ;;  %1660 = vmatmul.msk.bf16.gmra.mxu3 %vm159_vm0, %v1925_v26  ;;  %v1749_v26 = vor.u32 %v1960_v25, %v1748_v23 }
  0x34   :  { %1048 = vmatpush.bf16.msrb.mxu1 %v1749_v26 }
  0x38   :  { %1049 = vmatpush.bf16.msrb.mxu1 %v1741_v38 }
  0x3c   :  { %1050 = vmatpush.bf16.msrb.mxu1 %v1733_v50 }
  0x40   :  { %1637 = vmatmul.msk.bf16.gmra.mxu0 %vm159_vm0, %v1926_v27 }
  0x41   :  { %1645 = vmatmul.msk.bf16.gmra.mxu1 %vm159_vm0, %v1926_v27 }
  0x42   :  { %1653 = vmatmul.msk.bf16.gmra.mxu2 %vm159_vm0, %v1926_v27  ;;  %1661 = vmatmul.msk.bf16.gmra.mxu3 %vm159_vm0, %v1926_v27  ;;  %v1820_v27 = vld [vmem:[#allocation3 + $0x130] sm:$0xf] }
  0x43   :  { %v1821_v30 = vor.u32 %v1978_v28, %v1820_v27 }
  0x45   :  { %1096 = vmatpush.bf16.msrb.mxu2 %v1821_v30 }
  0x50   :  { %1638 = vmatmul.msk.bf16.gmra.mxu0 %vm159_vm0, %v1927_v40 }
  0x51   :  { %1646 = vmatmul.msk.bf16.gmra.mxu1 %vm159_vm0, %v1927_v40 }
  0x52   :  { %1654 = vmatmul.msk.bf16.gmra.mxu2 %vm159_vm0, %v1927_v40  ;;  %1662 = vmatmul.msk.bf16.gmra.mxu3 %vm159_vm0, %v1927_v40  ;;  %v1976_v40 = vld [vmem:[#allocation3 + $0x124] sm:$0xf0] }
  0x53   :  { %v1813_v42 = vor.u32 %v1976_v40, %v1812_v39 }
  0x55   :  { %1097 = vmatpush.bf16.msrb.mxu2 %v1813_v42 }
  0x59   :  { %1098 = vmatpush.bf16.msrb.mxu2 %v1805_v55 }
  0x5d   :  { %1099 = vmatpush.bf16.msrb.mxu2 %v1797_v61 }
  0x60   :  { %1639 = vmatmul.msk.bf16.gmra.mxu0 %vm159_vm0, %v1928_v53 }
  0x61   :  { %1647 = vmatmul.msk.bf16.gmra.mxu1 %vm159_vm0, %v1928_v53 }
  0x62   :  { %1655 = vmatmul.msk.bf16.gmra.mxu2 %vm159_vm0, %v1928_v53  ;;  %1663 = vmatmul.msk.bf16.gmra.mxu3 %vm159_vm0, %v1928_v53  ;;  %v1868_v53 = vld [vmem:[#allocation3 + $0x190] sm:$0xf] }
  0x63   :  { %v1869_v57 = vor.u32 %v1990_v56, %v1868_v53 }
  0x65   :  { %1147 = vmatpush.bf16.msrb.mxu3 %v1869_v57 }
  0x69   :  { %1148 = vmatpush.bf16.msrb.mxu3 %v1861_v63 }
  0x70   :  { %1640 = vmatmul.msk.bf16.gmra.mxu0 %vm159_vm0, %v1929_v8 }
  0x71   :  { %1648 = vmatmul.msk.bf16.gmra.mxu1 %vm159_vm0, %v1929_v8 }
  0x72   :  { %1656 = vmatmul.msk.bf16.gmra.mxu2 %vm159_vm0, %v1929_v8  ;;  %1664 = vmatmul.msk.bf16.gmra.mxu3 %vm159_vm0, %v1929_v8 }
  0x80   :  { %1641 = vmatmul.msk.bf16.gmra.mxu0 %vm159_vm0, %v1930_v54 }
  0x81   :  { %1649 = vmatmul.msk.bf16.gmra.mxu1 %vm159_vm0, %v1930_v54 }
  0x82   :  { %1657 = vmatmul.msk.bf16.gmra.mxu2 %vm159_vm0, %v1930_v54  ;;  %1665 = vmatmul.msk.bf16.gmra.mxu3 %vm159_vm0, %v1930_v54 }
  0x8d   :  { %v193_v1 = vpop.f32.mrf.mxu0 }
  0x8e   :  { %v242_v4 = vpop.f32.mrf.mxu1  ;;  %v194_v6 = vadd.f32 %v193_v1, %v2219_v3 }
  0x8f   :  { %v243_v5 = vadd.f32 %v242_v4, %v2217_v2 }
  0x90   :  { %v444_v12 = vmul.f32 0.2, %v194_v6  ;;  %vm380_vm2 = vcmp.gt.f32.partialorder %v194_v6, 0.0 }
  0x91   :  { %v445_v8 = vmul.f32 0.2, %v243_v5  ;;  %vm381_vm1 = vcmp.gt.f32.partialorder %v243_v5, 0.0 }
  0x92   :  { %v508_v22 = vsel %vm380_vm2, %v194_v6, %v444_v12 }
  0x93   :  { %v509_v20 = vsel %vm381_vm1, %v243_v5, %v445_v8 }
  0x95   :  { %v291_v7 = vpop.f32.mrf.mxu2  ;;  %v340_v10 = vpop.f32.mrf.mxu3 }
  0x96   :  { %v195_v11 = vpop.f32.mrf.mxu0  ;;  %v244_v15 = vpop.f32.mrf.mxu1  ;;  %v292_v18 = vadd.f32 %v291_v7, %v2223_v9  ;;  %v341_v21 = vadd.f32 %v340_v10, %v2225_v13 }
  0x97   :  { %v196_v14 = vadd.f32 %v195_v11, %v2219_v3  ;;  %v245_v16 = vadd.f32 %v244_v15, %v2217_v2 }
  0x98   :  { %v446_v28 = vmul.f32 0.2, %v292_v18  ;;  %vm382_vm5 = vcmp.gt.f32.partialorder %v292_v18, 0.0  ;;  %v447_v32 = vmul.f32 0.2, %v341_v21  ;;  %vm383_vm6 = vcmp.gt.f32.partialorder %v341_v21, 0.0 }
  0x99   :  { %vm384_vm3 = vcmp.gt.f32.partialorder %v196_v14, 0.0  ;;  %v448_v17 = vmul.f32 0.2, %v196_v14  ;;  %vm385_vm4 = vcmp.gt.f32.partialorder %v245_v16, 0.0  ;;  %v449_v19 = vmul.f32 0.2, %v245_v16 }
  0x9a   :  { %v510_v38 = vsel %vm382_vm5, %v292_v18, %v446_v28  ;;  %v511_v42 = vsel %vm383_vm6, %v341_v21, %v447_v32 }
  0x9b   :  { %v512_v23 = vsel %vm384_vm3, %v196_v14, %v448_v17  ;;  %v513_v25 = vsel %vm385_vm4, %v245_v16, %v449_v19 }
  0x9c   :  { %v2231_v24 = vpack.c.bf16 %v512_v23, %v508_v22  ;;  %v2233_v27 = vpack.c.bf16 %v513_v25, %v509_v20 }
  0x9d   :  { %v293_v26 = vpop.f32.mrf.mxu2  ;;  %v342_v30 = vpop.f32.mrf.mxu3 }
  0x9e   :  { %v294_v29 = vadd.f32 %v293_v26, %v2223_v9  ;;  %v198_v31 = vpop.f32.mrf.mxu0  ;;  %1002 = vmatmul.bf16.vlgmr.msrb.gmra.mxu0 %v2231_v24  ;;  %v343_v33 = vadd.f32 %v342_v30, %v2225_v13  ;;  %v247_v34 = vpop.f32.mrf.mxu1  ;;  %1051 = vmatmul.bf16.vlgmr.msrb.gmra.mxu1 %v2233_v27 }
  0x9f   :  { %v248_v37 = vadd.f32 %v247_v34, %v2217_v2  ;;  %v199_v40 = vadd.f32 %v198_v31, %v2219_v3 }
  0xa0   :  { %vm386_vm7 = vcmp.gt.f32.partialorder %v294_v29, 0.0  ;;  %v450_v35 = vmul.f32 0.2, %v294_v29  ;;  %vm387_vm8 = vcmp.gt.f32.partialorder %v343_v33, 0.0  ;;  %v451_v36 = vmul.f32 0.2, %v343_v33 }
  0xa1   :  { %v453_v46 = vmul.f32 0.2, %v248_v37  ;;  %v452_v49 = vmul.f32 0.2, %v199_v40  ;;  %vm389_vm9 = vcmp.gt.f32.partialorder %v248_v37, 0.0  ;;  %vm388_vm10 = vcmp.gt.f32.partialorder %v199_v40, 0.0 }
  0xa2   :  { %v514_v39 = vsel %vm386_vm7, %v294_v29, %v450_v35  ;;  %v515_v43 = vsel %vm387_vm8, %v343_v33, %v451_v36 }
  0xa3   :  { %v2241_v41 = vpack.c.bf16 %v514_v39, %v510_v38  ;;  %v2243_v44 = vpack.c.bf16 %v515_v43, %v511_v42  ;;  %v517_v56 = vsel %vm389_vm9, %v248_v37, %v453_v46  ;;  %v516_v58 = vsel %vm388_vm10, %v199_v40, %v452_v49 }
  0xa5   :  { %v296_v45 = vpop.f32.mrf.mxu2  ;;  %1100 = vmatmul.bf16.vlgmr.msrb.gmra.mxu2 %v2241_v41  ;;  %v345_v47 = vpop.f32.mrf.mxu3  ;;  %1149 = vmatmul.bf16.vlgmr.msrb.gmra.mxu3 %v2243_v44 }
  0xa6   :  { %v200_v48 = vpop.f32.mrf.mxu0  ;;  %v249_v51 = vpop.f32.mrf.mxu1  ;;  %v297_v54 = vadd.f32 %v296_v45, %v2223_v9  ;;  %v346_v57 = vadd.f32 %v345_v47, %v2225_v13 }
  0xa7   :  { %v201_v50 = vadd.f32 %v200_v48, %v2219_v3  ;;  %v250_v52 = vadd.f32 %v249_v51, %v2217_v2 }
  0xa8   :  { %v454_v0 = vmul.f32 0.2, %v297_v54  ;;  %v455_v6 = vmul.f32 0.2, %v346_v57  ;;  %vm390_vm13 = vcmp.gt.f32.partialorder %v297_v54, 0.0  ;;  %vm391_vm15 = vcmp.gt.f32.partialorder %v346_v57, 0.0 }
  0xa9   :  { %v456_v53 = vmul.f32 0.2, %v201_v50  ;;  %vm392_vm11 = vcmp.gt.f32.partialorder %v201_v50, 0.0  ;;  %v457_v55 = vmul.f32 0.2, %v250_v52  ;;  %vm393_vm12 = vcmp.gt.f32.partialorder %v250_v52, 0.0 }
  0xaa   :  { %v518_v14 = vsel %vm390_vm13, %v297_v54, %v454_v0  ;;  %v519_v18 = vsel %vm391_vm15, %v346_v57, %v455_v6 }
  0xab   :  { %v520_v59 = vsel %vm392_vm11, %v201_v50, %v456_v53  ;;  %v521_v61 = vsel %vm393_vm12, %v250_v52, %v457_v55 }
  0xac   :  { %v2251_v60 = vpack.c.bf16 %v520_v59, %v516_v58  ;;  %v2253_v63 = vpack.c.bf16 %v521_v61, %v517_v56 }
  0xad   :  { %v298_v62 = vpop.f32.mrf.mxu2  ;;  %v347_v4 = vpop.f32.mrf.mxu3 }
  0xae   :  { %v299_v1 = vadd.f32 %v298_v62, %v2223_v9  ;;  %v203_v5 = vpop.f32.mrf.mxu0  ;;  %1007 = vmatmul.bf16.gmra.mxu0 %v2251_v60  ;;  %v348_v7 = vadd.f32 %v347_v4, %v2225_v13  ;;  %v252_v8 = vpop.f32.mrf.mxu1  ;;  %1056 = vmatmul.bf16.gmra.mxu1 %v2253_v63 }
  0xaf   :  { %v253_v12 = vadd.f32 %v252_v8, %v2217_v2  ;;  %v204_v16 = vadd.f32 %v203_v5, %v2219_v3 }
  0xb0   :  { %v458_v10 = vmul.f32 0.2, %v299_v1  ;;  %vm394_vm14 = vcmp.gt.f32.partialorder %v299_v1, 0.0  ;;  %v459_v11 = vmul.f32 0.2, %v348_v7  ;;  %vm395_vm0 = vcmp.gt.f32.partialorder %v348_v7, 0.0 }
  0xb1   :  { %v461_v22 = vmul.f32 0.2, %v253_v12  ;;  %v460_v26 = vmul.f32 0.2, %v204_v16  ;;  %vm397_vm1 = vcmp.gt.f32.partialorder %v253_v12, 0.0  ;;  %vm396_vm2 = vcmp.gt.f32.partialorder %v204_v16, 0.0 }
  0xb2   :  { %v522_v15 = vsel %vm394_vm14, %v299_v1, %v458_v10  ;;  %v523_v19 = vsel %vm395_vm0, %v348_v7, %v459_v11 }
  0xb3   :  { %v2261_v17 = vpack.c.bf16 %v522_v15, %v518_v14  ;;  %v2263_v20 = vpack.c.bf16 %v523_v19, %v519_v18  ;;  %v525_v34 = vsel %vm397_vm1, %v253_v12, %v461_v22  ;;  %v524_v36 = vsel %vm396_vm2, %v204_v16, %v460_v26  ;;  %v1985_v15 = vld [vmem:[#allocation3 + $0x174] sm:$0xf] }
  0xb4   :  { %v1953_v22 = vld [vmem:[#allocation3 + $0x74] sm:$0xf] }
  0xb5   :  { %v301_v21 = vpop.f32.mrf.mxu2  ;;  %1105 = vmatmul.bf16.gmra.mxu2 %v2261_v17  ;;  %v350_v23 = vpop.f32.mrf.mxu3  ;;  %1154 = vmatmul.bf16.gmra.mxu3 %v2263_v20 }
  0xb6   :  { %v205_v25 = vpop.f32.mrf.mxu0  ;;  %v254_v29 = vpop.f32.mrf.mxu1  ;;  %v302_v32 = vadd.f32 %v301_v21, %v2223_v9  ;;  %v351_v35 = vadd.f32 %v350_v23, %v2225_v13  ;;  %v1854_v21 = vld [vmem:[#allocation3 + $0x178] sm:$0xf0] }
  0xb7   :  { %v206_v28 = vadd.f32 %v205_v25, %v2219_v3  ;;  %v255_v30 = vadd.f32 %v254_v29, %v2217_v2  ;;  %v1726_v23 = vld [vmem:[#allocation3 + $0x78] sm:$0xf0] }
  0xb8   :  { %v462_v43 = vmul.f32 0.2, %v302_v32  ;;  %v463_v48 = vmul.f32 0.2, %v351_v35  ;;  %vm398_vm5 = vcmp.gt.f32.partialorder %v302_v32, 0.0  ;;  %vm399_vm7 = vcmp.gt.f32.partialorder %v351_v35, 0.0 }
  0xb9   :  { %v464_v31 = vmul.f32 0.2, %v206_v28  ;;  %vm400_vm3 = vcmp.gt.f32.partialorder %v206_v28, 0.0  ;;  %v465_v33 = vmul.f32 0.2, %v255_v30  ;;  %vm401_vm4 = vcmp.gt.f32.partialorder %v255_v30, 0.0 }
  0xba   :  { %v526_v54 = vsel %vm398_vm5, %v302_v32, %v462_v43  ;;  %v527_v58 = vsel %vm399_vm7, %v351_v35, %v463_v48  ;;  %v1729_v29 = vor.u32 %v1953_v22, %v1726_v23  ;;  %v1969_v32 = vld [vmem:[#allocation3 + $0xf4] sm:$0xf]  ;;  %v1951_v22 = vld [vmem:[#allocation3 + $0x64] sm:$0xf]  ;;  %v1718_v23 = vld [vmem:[#allocation3 + $0x68] sm:$0xf0] }
  0xbb   :  { %v528_v37 = vsel %vm400_vm3, %v206_v28, %v464_v31  ;;  %v529_v39 = vsel %vm401_vm4, %v255_v30, %v465_v33  ;;  %v1857_v28 = vor.u32 %v1985_v15, %v1854_v21  ;;  %v2001_v30 = vld [vmem:[#allocation3 + $0x1f4] sm:$0xf]  ;;  %v1918_v31 = vld [vmem:[#allocation3 + $0x1f8] sm:$0xf0]  ;;  %v1983_v15 = vld [vmem:[#allocation3 + $0x164] sm:$0xf] }
  0xbc   :  { %v2271_v38 = vpack.c.bf16 %v528_v37, %v524_v36  ;;  %v2273_v42 = vpack.c.bf16 %v529_v39, %v525_v34  ;;  %v1921_v35 = vor.u32 %v2001_v30, %v1918_v31  ;;  %v1790_v36 = vld [vmem:[#allocation3 + $0xf8] sm:$0xf0]  ;;  %1190 = vmatpush.bf16.msra.mxu0 %v1729_v29  ;;  %v1846_v21 = vld [vmem:[#allocation3 + $0x168] sm:$0xf0]  ;;  %v1721_v30 = vor.u32 %v1951_v22, %v1718_v23  ;;  %v1999_v31 = vld [vmem:[#allocation3 + $0x1e4] sm:$0xf] }
  0xbd   :  { %v303_v40 = vpop.f32.mrf.mxu2  ;;  %v352_v46 = vpop.f32.mrf.mxu3  ;;  %1288 = vmatpush.bf16.msra.mxu2 %v1857_v28  ;;  %v1849_v29 = vor.u32 %v1983_v15, %v1846_v21  ;;  %v1774_v21 = vld [vmem:[#allocation3 + $0xd8] sm:$0xf0] }
  0xbe   :  { %v304_v45 = vadd.f32 %v303_v40, %v2223_v9  ;;  %v208_v47 = vpop.f32.mrf.mxu0  ;;  %1012 = vmatmul.bf16.gmra.mxu0 %v2271_v38  ;;  %v353_v49 = vadd.f32 %v352_v46, %v2225_v13  ;;  %v257_v50 = vpop.f32.mrf.mxu1  ;;  %1061 = vmatmul.bf16.gmra.mxu1 %v2273_v42 }
  0xbf   :  { %v258_v53 = vadd.f32 %v257_v50, %v2217_v2  ;;  %v209_v56 = vadd.f32 %v208_v47, %v2219_v3  ;;  %1337 = vmatpush.bf16.msra.mxu3 %v1921_v35 }
  0xc0   :  { %v466_v51 = vmul.f32 0.2, %v304_v45  ;;  %vm402_vm6 = vcmp.gt.f32.partialorder %v304_v45, 0.0  ;;  %v467_v52 = vmul.f32 0.2, %v353_v49  ;;  %vm403_vm8 = vcmp.gt.f32.partialorder %v353_v49, 0.0  ;;  %1191 = vmatpush.bf16.msra.mxu0 %v1721_v30 }
  0xc1   :  { %v469_v0 = vmul.f32 0.2, %v258_v53  ;;  %v468_v5 = vmul.f32 0.2, %v209_v56  ;;  %vm405_vm9 = vcmp.gt.f32.partialorder %v258_v53, 0.0  ;;  %vm404_vm10 = vcmp.gt.f32.partialorder %v209_v56, 0.0  ;;  %1289 = vmatpush.bf16.msra.mxu2 %v1849_v29 }
  0xc2   :  { %v530_v55 = vsel %vm402_vm6, %v304_v45, %v466_v51  ;;  %v531_v59 = vsel %vm403_vm8, %v353_v49, %v467_v52  ;;  %v1793_v45 = vor.u32 %v1969_v32, %v1790_v36  ;;  %v1910_v32 = vld [vmem:[#allocation3 + $0x1e8] sm:$0xf0] }
  0xc3   :  { %v2281_v57 = vpack.c.bf16 %v530_v55, %v526_v54  ;;  %v2283_v61 = vpack.c.bf16 %v531_v59, %v527_v58  ;;  %v533_v14 = vsel %vm405_vm9, %v258_v53, %v469_v0  ;;  %v532_v18 = vsel %vm404_vm10, %v209_v56, %v468_v5 }
  0xc4   :  { %1239 = vmatpush.bf16.msra.mxu1 %v1793_v45 }
  0xc5   :  { %v306_v62 = vpop.f32.mrf.mxu2  ;;  %1110 = vmatmul.bf16.gmra.mxu2 %v2281_v57  ;;  %v355_v1 = vpop.f32.mrf.mxu3  ;;  %1159 = vmatmul.bf16.gmra.mxu3 %v2283_v61 }
  0xc6   :  { %v210_v4 = vpop.f32.mrf.mxu0  ;;  %v259_v7 = vpop.f32.mrf.mxu1  ;;  %v307_v11 = vadd.f32 %v306_v62, %v2223_v9  ;;  %v356_v16 = vadd.f32 %v355_v1, %v2225_v13 }
  0xc7   :  { %v211_v6 = vadd.f32 %v210_v4, %v2219_v3  ;;  %v260_v8 = vadd.f32 %v259_v7, %v2217_v2 }
  0xc8   :  { %v470_v37 = vmul.f32 0.2, %v307_v11  ;;  %v471_v46 = vmul.f32 0.2, %v356_v16  ;;  %vm406_vm13 = vcmp.gt.f32.partialorder %v307_v11, 0.0  ;;  %vm407_vm15 = vcmp.gt.f32.partialorder %v356_v16, 0.0 }
  0xc9   :  { %v472_v10 = vmul.f32 0.2, %v211_v6  ;;  %vm408_vm11 = vcmp.gt.f32.partialorder %v211_v6, 0.0  ;;  %v473_v12 = vmul.f32 0.2, %v260_v8  ;;  %vm409_vm12 = vcmp.gt.f32.partialorder %v260_v8, 0.0 }
  0xca   :  { %v534_v52 = vsel %vm406_vm13, %v307_v11, %v470_v37  ;;  %v535_v56 = vsel %vm407_vm15, %v356_v16, %v471_v46  ;;  %v1913_v37 = vor.u32 %v1999_v31, %v1910_v32  ;;  %v1981_v32 = vld [vmem:[#allocation3 + $0x154] sm:$0xf] }
  0xcb   :  { %v536_v19 = vsel %vm408_vm11, %v211_v6, %v472_v10  ;;  %v537_v26 = vsel %vm409_vm12, %v260_v8, %v473_v12 }
  0xcc   :  { %v2291_v25 = vpack.c.bf16 %v536_v19, %v532_v18  ;;  %v2293_v34 = vpack.c.bf16 %v537_v26, %v533_v14  ;;  %1338 = vmatpush.bf16.msra.mxu3 %v1913_v37  ;;  %v1838_v37 = vld [vmem:[#allocation3 + $0x158] sm:$0xf0] }
  0xcd   :  { %v308_v33 = vpop.f32.mrf.mxu2  ;;  %v357_v40 = vpop.f32.mrf.mxu3 }
  0xce   :  { %v309_v39 = vadd.f32 %v308_v33, %v2223_v9  ;;  %v213_v43 = vpop.f32.mrf.mxu0  ;;  %1017 = vmatmul.bf16.gmra.mxu0 %v2291_v25  ;;  %v358_v47 = vadd.f32 %v357_v40, %v2225_v13  ;;  %v262_v48 = vpop.f32.mrf.mxu1  ;;  %1066 = vmatmul.bf16.gmra.mxu1 %v2293_v34  ;;  %v1967_v33 = vld [vmem:[#allocation3 + $0xe4] sm:$0xf] }
  0xcf   :  { %v263_v51 = vadd.f32 %v262_v48, %v2217_v2  ;;  %v214_v54 = vadd.f32 %v213_v43, %v2219_v3 }
  0xd0   :  { %v474_v49 = vmul.f32 0.2, %v309_v39  ;;  %vm410_vm14 = vcmp.gt.f32.partialorder %v309_v39, 0.0  ;;  %v475_v50 = vmul.f32 0.2, %v358_v47  ;;  %vm411_vm0 = vcmp.gt.f32.partialorder %v358_v47, 0.0 }
  0xd1   :  { %v477_v0 = vmul.f32 0.2, %v263_v51  ;;  %v476_v5 = vmul.f32 0.2, %v214_v54  ;;  %vm413_vm1 = vcmp.gt.f32.partialorder %v263_v51, 0.0  ;;  %vm412_vm2 = vcmp.gt.f32.partialorder %v214_v54, 0.0 }
  0xd2   :  { %v538_v53 = vsel %vm410_vm14, %v309_v39, %v474_v49  ;;  %v539_v58 = vsel %vm411_vm0, %v358_v47, %v475_v50  ;;  %v1782_v39 = vld [vmem:[#allocation3 + $0xe8] sm:$0xf0] }
  0xd3   :  { %v2301_v55 = vpack.c.bf16 %v538_v53, %v534_v52  ;;  %v2303_v59 = vpack.c.bf16 %v539_v58, %v535_v56  ;;  %v541_v14 = vsel %vm413_vm1, %v263_v51, %v477_v0  ;;  %v540_v18 = vsel %vm412_vm2, %v214_v54, %v476_v5 }
  0xd4   :  { %v1785_v47 = vor.u32 %v1967_v33, %v1782_v39  ;;  %v1997_v39 = vld [vmem:[#allocation3 + $0x1d4] sm:$0xf] }
  0xd5   :  { %v311_v62 = vpop.f32.mrf.mxu2  ;;  %1115 = vmatmul.bf16.gmra.mxu2 %v2301_v55  ;;  %v360_v1 = vpop.f32.mrf.mxu3  ;;  %1164 = vmatmul.bf16.gmra.mxu3 %v2303_v59 }
  0xd6   :  { %v215_v4 = vpop.f32.mrf.mxu0  ;;  %v264_v7 = vpop.f32.mrf.mxu1  ;;  %v312_v11 = vadd.f32 %v311_v62, %v2223_v9  ;;  %v361_v16 = vadd.f32 %v360_v1, %v2225_v13  ;;  %1240 = vmatpush.bf16.msra.mxu1 %v1785_v47 }
  0xd7   :  { %v216_v6 = vadd.f32 %v215_v4, %v2219_v3  ;;  %v265_v8 = vadd.f32 %v264_v7, %v2217_v2 }
  0xd8   :  { %v478_v40 = vmul.f32 0.2, %v312_v11  ;;  %vm414_vm5 = vcmp.gt.f32.partialorder %v312_v11, 0.0  ;;  %v479_v48 = vmul.f32 0.2, %v361_v16  ;;  %vm415_vm6 = vcmp.gt.f32.partialorder %v361_v16, 0.0 }
  0xd9   :  { %vm416_vm3 = vcmp.gt.f32.partialorder %v216_v6, 0.0  ;;  %v480_v10 = vmul.f32 0.2, %v216_v6  ;;  %vm417_vm4 = vcmp.gt.f32.partialorder %v265_v8, 0.0  ;;  %v481_v12 = vmul.f32 0.2, %v265_v8 }
  0xda   :  { %v542_v54 = vsel %vm414_vm5, %v312_v11, %v478_v40  ;;  %v543_v0 = vsel %vm415_vm6, %v361_v16, %v479_v48  ;;  %v1949_v11 = vld [vmem:[#allocation3 + $0x54] sm:$0xf]  ;;  %v1902_v40 = vld [vmem:[#allocation3 + $0x1d8] sm:$0xf0]  ;;  %v1947_v48 = vld [vmem:[#allocation3 + $0x44] sm:$0xf] }
  0xdb   :  { %v544_v19 = vsel %vm416_vm3, %v216_v6, %v480_v10  ;;  %v545_v28 = vsel %vm417_vm4, %v265_v8, %v481_v12  ;;  %v1710_v12 = vld [vmem:[#allocation3 + $0x58] sm:$0xf0]  ;;  %v1905_v47 = vor.u32 %v1997_v39, %v1902_v40 }
  0xdc   :  { %v2311_v26 = vpack.c.bf16 %v544_v19, %v540_v18  ;;  %v2313_v36 = vpack.c.bf16 %v545_v28, %v541_v14  ;;  %v1965_v14 = vld [vmem:[#allocation3 + $0xd4] sm:$0xf]  ;;  %v1713_v19 = vor.u32 %v1949_v11, %v1710_v12 }
  0xdd   :  { %v313_v35 = vpop.f32.mrf.mxu2  ;;  %v362_v45 = vpop.f32.mrf.mxu3  ;;  %v1777_v23 = vor.u32 %v1965_v14, %v1774_v21  ;;  %1339 = vmatpush.bf16.msra.mxu3 %v1905_v47  ;;  %v1894_v47 = vld [vmem:[#allocation3 + $0x1c8] sm:$0xf0] }
  0xde   :  { %v314_v43 = vadd.f32 %v313_v35, %v2223_v9  ;;  %v218_v46 = vpop.f32.mrf.mxu0  ;;  %1022 = vmatmul.bf16.gmra.mxu0 %v2311_v26  ;;  %v363_v49 = vadd.f32 %v362_v45, %v2225_v13  ;;  %v267_v50 = vpop.f32.mrf.mxu1  ;;  %1071 = vmatmul.bf16.gmra.mxu1 %v2313_v36 }
  0xdf   :  { %v268_v53 = vadd.f32 %v267_v50, %v2217_v2  ;;  %v219_v58 = vadd.f32 %v218_v46, %v2219_v3  ;;  %1192 = vmatpush.bf16.msra.mxu0 %v1713_v19  ;;  %1241 = vmatpush.bf16.msra.mxu1 %v1777_v23  ;;  %v1841_v46 = vor.u32 %v1981_v32, %v1838_v37  ;;  %v1963_v50 = vld [vmem:[#allocation3 + $0xc4] sm:$0xf] }
  0xe0   :  { %vm418_vm7 = vcmp.gt.f32.partialorder %v314_v43, 0.0  ;;  %v482_v51 = vmul.f32 0.2, %v314_v43  ;;  %vm419_vm8 = vcmp.gt.f32.partialorder %v363_v49, 0.0  ;;  %v483_v52 = vmul.f32 0.2, %v363_v49 }
  0xe1   :  { %v485_v5 = vmul.f32 0.2, %v268_v53  ;;  %v484_v15 = vmul.f32 0.2, %v219_v58  ;;  %vm421_vm9 = vcmp.gt.f32.partialorder %v268_v53, 0.0  ;;  %vm420_vm10 = vcmp.gt.f32.partialorder %v219_v58, 0.0  ;;  %1290 = vmatpush.bf16.msra.mxu2 %v1841_v46 }
  0xe2   :  { %v546_v56 = vsel %vm418_vm7, %v314_v43, %v482_v51  ;;  %v547_v1 = vsel %vm419_vm8, %v363_v49, %v483_v52  ;;  %v1702_v49 = vld [vmem:[#allocation3 + $0x48] sm:$0xf0]  ;;  %v1979_v23 = vld [vmem:[#allocation3 + $0x144] sm:$0xf] }
  0xe3   :  { %v2321_v62 = vpack.c.bf16 %v546_v56, %v542_v54  ;;  %v2323_v4 = vpack.c.bf16 %v547_v1, %v543_v0  ;;  %v549_v31 = vsel %vm421_vm9, %v268_v53, %v485_v5  ;;  %v548_v33 = vsel %vm420_vm10, %v219_v58, %v484_v15  ;;  %v1766_v56 = vld [vmem:[#allocation3 + $0xc8] sm:$0xf0]  ;;  %v1995_v46 = vld [vmem:[#allocation3 + $0x1c4] sm:$0xf] }
  0xe4   :  { %v1705_v54 = vor.u32 %v1947_v48, %v1702_v49  ;;  %v1769_v5 = vor.u32 %v1963_v50, %v1766_v56  ;;  %v1943_v48 = vld [vmem:[#allocation3 + $0x24] sm:$0xf]  ;;  %v1897_v50 = vor.u32 %v1995_v46, %v1894_v47  ;;  %v1750_v56 = vld [vmem:[#allocation3 + $0xa8] sm:$0xf0] }
  0xe5   :  { %v316_v6 = vpop.f32.mrf.mxu2  ;;  %1120 = vmatmul.bf16.gmra.mxu2 %v2321_v62  ;;  %v365_v8 = vpop.f32.mrf.mxu3  ;;  %1169 = vmatmul.bf16.gmra.mxu3 %v2323_v4 }
  0xe6   :  { %v2327_v7 = vadd.f32 %v316_v6, %v2223_v9  ;;  %v220_v10 = vpop.f32.mrf.mxu0  ;;  %v269_v18 = vpop.f32.mrf.mxu1  ;;  %v366_v28 = vadd.f32 %v365_v8, %v2225_v13  ;;  %v1945_v6 = vld [vmem:[#allocation3 + $0x34] sm:$0xf]  ;;  %v1694_v8 = vld [vmem:[#allocation3 + $0x38] sm:$0xf0]  ;;  %1193 = vmatpush.bf16.msra.mxu0 %v1705_v54  ;;  %1242 = vmatpush.bf16.msra.mxu1 %v1769_v5  ;;  %v1959_v54 = vld [vmem:[#allocation3 + $0xa4] sm:$0xf] }
  0xe7   :  { %v221_v16 = vadd.f32 %v220_v10, %v2219_v3  ;;  %v270_v22 = vadd.f32 %v269_v18, %v2217_v2  ;;  %v1961_v10 = vld [vmem:[#allocation3 + $0xb4] sm:$0xf]  ;;  %v1758_v18 = vld [vmem:[#allocation3 + $0xb8] sm:$0xf0]  ;;  %1340 = vmatpush.bf16.msra.mxu3 %v1897_v50  ;;  %v1991_v50 = vld [vmem:[#allocation3 + $0x1a4] sm:$0xf] }
  0xe8   :  { %vm422_vm12 = vcmp.gt.f32.partialorder %v2327_v7, 0.0  ;;  %v486_v51 = vmul.f32 0.2, %v2327_v7  ;;  %vm423_vm14 = vcmp.gt.f32.partialorder %v366_v28, 0.0  ;;  %v487_v11 = vmul.f32 0.2, %v366_v28 }
  0xe9   :  { %vm424_vm11 = vcmp.gt.f32.partialorder %v221_v16, 0.0  ;;  %v488_v29 = vmul.f32 0.2, %v221_v16  ;;  %vm425_vm13 = vcmp.gt.f32.partialorder %v270_v22, 0.0  ;;  %v489_v30 = vmul.f32 0.2, %v270_v22 }
  0xea   :  { %v550_v32 = vsel %vm422_vm12, %v2327_v7, %v486_v51  ;;  %v551_v39 = vsel %vm423_vm14, %v366_v28, %v487_v11  ;;  %v1822_v28 = vld [vmem:[#allocation3 + $0x138] sm:$0xf0] }
  0xeb   :  { %v552_v35 = vsel %vm424_vm11, %v221_v16, %v488_v29  ;;  %v553_v45 = vsel %vm425_vm13, %v270_v22, %v489_v30  ;;  %v1697_v16 = vor.u32 %v1945_v6, %v1694_v8  ;;  %v1761_v22 = vor.u32 %v1961_v10, %v1758_v18  ;;  %v1886_v11 = vld [vmem:[#allocation3 + $0x1b8] sm:$0xf0] }
  0xec   :  { %v2334_v43 = vpack.c.bf16 %v552_v35, %v548_v33  ;;  %v2337_v53 = vpack.c.bf16 %v553_v45, %v549_v31  ;;  %v1830_v35 = vld [vmem:[#allocation3 + $0x148] sm:$0xf0] }
  0xed   :  { %v318_v52 = vpop.f32.mrf.mxu2  ;;  %v367_v0 = vpop.f32.mrf.mxu3  ;;  %v1833_v45 = vor.u32 %v1979_v23, %v1830_v35  ;;  %1194 = vmatpush.bf16.msra.mxu0 %v1697_v16  ;;  %1243 = vmatpush.bf16.msra.mxu1 %v1761_v22  ;;  %v1957_v23 = vld [vmem:[#allocation3 + $0x94] sm:$0xf] }
  0xee   :  { %v319_v58 = vadd.f32 %v318_v52, %v2223_v9  ;;  %v223_v1 = vpop.f32.mrf.mxu0  ;;  %1027 = vmatmul.bf16.gmra.mxu0 %v2334_v43  ;;  %v368_v12 = vadd.f32 %v367_v0, %v2225_v13  ;;  %v272_v15 = vpop.f32.mrf.mxu1  ;;  %1076 = vmatmul.bf16.gmra.mxu1 %v2337_v53  ;;  %v1686_v52 = vld [vmem:[#allocation3 + $0x28] sm:$0xf0]  ;;  %v1977_v0 = vld [vmem:[#allocation3 + $0x134] sm:$0xf] }
  0xef   :  { %v2343_v14 = vadd.f32 %v223_v1, %v2219_v3  ;;  %v273_v21 = vadd.f32 %v272_v15, %v2217_v2  ;;  %v1689_v51 = vor.u32 %v1943_v48, %v1686_v52  ;;  %v1993_v1 = vld [vmem:[#allocation3 + $0x1b4] sm:$0xf]  ;;  %1291 = vmatpush.bf16.msra.mxu2 %v1833_v45  ;;  %v1825_v10 = vor.u32 %v1977_v0, %v1822_v28  ;;  %v1678_v15 = vld [vmem:[#allocation3 + $0x18] sm:$0xf0]  ;;  %v1670_v0 = vld [vmem:[#allocation3 + $0x8] sm:$0xf0] }
  0xf0   :  { %vm426_vm15 = vcmp.gt.f32.partialorder %v319_v58, 0.0  ;;  %v490_v19 = vmul.f32 0.2, %v319_v58  ;;  %vm427_vm0 = vcmp.gt.f32.partialorder %v368_v12, 0.0  ;;  %v491_v29 = vmul.f32 0.2, %v368_v12 }
  0xf1   :  { %v492_v30 = vmul.f32 0.2, %v2343_v14  ;;  %vm429_vm1 = vcmp.gt.f32.partialorder %v273_v21, 0.0  ;;  %v493_v31 = vmul.f32 0.2, %v273_v21  ;;  %v1889_v22 = vor.u32 %v1993_v1, %v1886_v11  ;;  %1195 = vmatpush.bf16.msra.mxu0 %v1689_v51 }
  0xf2   :  { %v554_v33 = vsel %vm426_vm15, %v319_v58, %v490_v19  ;;  %v555_v40 = vsel %vm427_vm0, %v368_v12, %v491_v29  ;;  %v1753_v58 = vor.u32 %v1959_v54, %v1750_v56  ;;  %v1941_v12 = vld [vmem:[#allocation3 + $0x14] sm:$0xf]  ;;  %v1742_v29 = vld [vmem:[#allocation3 + $0x98] sm:$0xf0]  ;;  %vm428_vm2 = vcmp.gt.f32.partialorder %v2343_v14, 0.0 }
  0xf3   :  { %v2351_v37 = vpack.c.bf16 %v554_v33, %v550_v32  ;;  %v2354_v49 = vpack.c.bf16 %v555_v40, %v551_v39  ;;  %v1975_v32 = vld [vmem:[#allocation3 + $0x124] sm:$0xf]  ;;  %v1681_v35 = vor.u32 %v1941_v12, %v1678_v15  ;;  %v1745_v39 = vor.u32 %v1957_v23, %v1742_v29  ;;  %v1814_v40 = vld [vmem:[#allocation3 + $0x128] sm:$0xf0]  ;;  %1292 = vmatpush.bf16.msra.mxu2 %v1825_v10  ;;  %v1989_v23 = vld [vmem:[#allocation3 + $0x194] sm:$0xf] }
  0xf4   :  { %1244 = vmatpush.bf16.msra.mxu1 %v1753_v58  ;;  %v557_v46 = vsel %vm429_vm1, %v273_v21, %v493_v31  ;;  %v1817_v48 = vor.u32 %v1975_v32, %v1814_v40  ;;  %v556_v54 = vsel %vm428_vm2, %v2343_v14, %v492_v30  ;;  %1341 = vmatpush.bf16.msra.mxu3 %v1889_v22  ;;  %v1939_v51 = vld [vmem:[#allocation3 + $0x4] sm:$0xf]  ;;  %v1734_v10 = vld [vmem:[#allocation3 + $0x88] sm:$0xf0]  ;;  %v1973_v14 = vld [vmem:[#allocation3 + $0x114] sm:$0xf] }
  0xf5   :  { %v321_v7 = vpop.f32.mrf.mxu2  ;;  %1125 = vmatmul.bf16.gmra.mxu2 %v2351_v37  ;;  %v370_v6 = vpop.f32.mrf.mxu3  ;;  %1174 = vmatmul.bf16.gmra.mxu3 %v2354_v49  ;;  %v1955_v28 = vld [vmem:[#allocation3 + $0x84] sm:$0xf]  ;;  %v1806_v30 = vld [vmem:[#allocation3 + $0x118] sm:$0xf0]  ;;  %v1798_v40 = vld [vmem:[#allocation3 + $0x108] sm:$0xf0] }
  0xf6   :  { %v2358_v5 = vadd.f32 %v321_v7, %v2223_v9  ;;  %v225_v8 = vpop.f32.mrf.mxu0  ;;  %v2362_v16 = vadd.f32 %v370_v6, %v2225_v13  ;;  %v274_v19 = vpop.f32.mrf.mxu1  ;;  %v1878_v7 = vld [vmem:[#allocation3 + $0x1a8] sm:$0xf0]  ;;  %1196 = vmatpush.bf16.msra.mxu0 %v1681_v35  ;;  %v1809_v22 = vor.u32 %v1973_v14, %v1806_v30  ;;  %v1870_v29 = vld [vmem:[#allocation3 + $0x198] sm:$0xf0] }
  0xf7   :  { %v226_v18 = vadd.f32 %v225_v8, %v2219_v3  ;;  %v275_v33 = vadd.f32 %v274_v19, %v2217_v2  ;;  %v1881_v58 = vor.u32 %v1991_v50, %v1878_v7  ;;  %v1673_v8 = vor.u32 %v1939_v51, %v1670_v0  ;;  %1293 = vmatpush.bf16.msra.mxu2 %v1817_v48 }
  0xf8   :  { %vm430_vm4 = vcmp.gt.f32.partialorder %v2358_v5, 0.0  ;;  %v494_v52 = vmul.f32 0.2, %v2358_v5  ;;  %vm431_vm6 = vcmp.gt.f32.partialorder %v2362_v16, 0.0  ;;  %1245 = vmatpush.bf16.msra.mxu1 %v1745_v39  ;;  %v495_v11 = vmul.f32 0.2, %v2362_v16 }
  0xf9   :  { %vm432_vm3 = vcmp.gt.f32.partialorder %v226_v18, 0.0  ;;  %v496_v45 = vmul.f32 0.2, %v226_v18  ;;  %vm433_vm5 = vcmp.gt.f32.partialorder %v275_v33, 0.0  ;;  %v497_v47 = vmul.f32 0.2, %v275_v33  ;;  %1342 = vmatpush.bf16.msra.mxu3 %v1881_v58 }
  0xfa   :  { %v1737_v19 = vor.u32 %v1955_v28, %v1734_v10  ;;  %v1873_v35 = vor.u32 %v1989_v23, %v1870_v29  ;;  %v1971_v39 = vld [vmem:[#allocation3 + $0x104] sm:$0xf]  ;;  %1197 = vmatpush.bf16.msra.mxu0 %v1673_v8  ;;  %v558_v50 = vsel %vm430_vm4, %v2358_v5, %v494_v52  ;;  %v559_v7 = vsel %vm431_vm6, %v2362_v16, %v495_v11 }
  0xfb   :  { %v560_v56 = vsel %vm432_vm3, %v226_v18, %v496_v45  ;;  %v561_v31 = vsel %vm433_vm5, %v275_v33, %v497_v47  ;;  %v1987_v45 = vld [vmem:[#allocation3 + $0x184] sm:$0xf]  ;;  %v1862_v47 = vld [vmem:[#allocation3 + $0x188] sm:$0xf0]  ;;  %1294 = vmatpush.bf16.msra.mxu2 %v1809_v22  ;;  %v1801_v51 = vor.u32 %v1971_v39, %v1798_v40 }
  0xfc   :  { %v2374_v21 = vpack.c.bf16 %v560_v56, %v556_v54  ;;  %v2376_v6 = vpack.c.bf16 %v561_v31, %v557_v46  ;;  %1246 = vmatpush.bf16.msra.mxu1 %v1737_v19  ;;  %v1865_v28 = vor.u32 %v1987_v45, %v1862_v47 }
  0xfd   :  { %v323_v1 = vpop.f32.mrf.mxu2  ;;  %v372_v15 = vpop.f32.mrf.mxu3  ;;  %1343 = vmatpush.bf16.msra.mxu3 %v1873_v35 }
  0xfe   :  { %v324_v12 = vadd.f32 %v323_v1, %v2223_v9  ;;  %v228_v18 = vpop.f32.mrf.mxu0  ;;  %1032 = vmatmul.bf16.gmra.mxu0 %v2374_v21  ;;  %v373_v32 = vadd.f32 %v372_v15, %v2225_v13  ;;  %v277_v33 = vpop.f32.mrf.mxu1  ;;  %1081 = vmatmul.bf16.gmra.mxu1 %v2376_v6 }
  0xff   :  { %v278_v54 = vadd.f32 %v277_v33, %v2217_v2  ;;  %v229_v31 = vadd.f32 %v228_v18, %v2219_v3  ;;  %1295 = vmatpush.bf16.msra.mxu2 %v1801_v51 }
 0x100   :  { %vm434_vm7 = vcmp.gt.f32.partialorder %v324_v12, 0.0  ;;  %v498_v46 = vmul.f32 0.2, %v324_v12  ;;  %vm435_vm8 = vcmp.gt.f32.partialorder %v373_v32, 0.0  ;;  %v499_v48 = vmul.f32 0.2, %v373_v32 }
 0x101   :  { %v501_v5 = vmul.f32 0.2, %v278_v54  ;;  %v500_v16 = vmul.f32 0.2, %v229_v31  ;;  %vm437_vm9 = vcmp.gt.f32.partialorder %v278_v54, 0.0  ;;  %1344 = vmatpush.bf16.msra.mxu3 %v1865_v28  ;;  %vm436_vm10 = vcmp.gt.f32.partialorder %v229_v31, 0.0 }
 0x102   :  { %v562_v56 = vsel %vm434_vm7, %v324_v12, %v498_v46  ;;  %v563_v0 = vsel %vm435_vm8, %v373_v32, %v499_v48 }
 0x103   :  { %v2391_v58 = vpack.c.bf16 %v562_v56, %v558_v50  ;;  %v2393_v1 = vpack.c.bf16 %v563_v0, %v559_v7  ;;  %v565_v19 = vsel %vm437_vm9, %v278_v54, %v501_v5  ;;  %v564_v23 = vsel %vm436_vm10, %v229_v31, %v500_v16 }
 0x105   :  { %v326_v8 = vpop.f32.mrf.mxu2  ;;  %1130 = vmatmul.bf16.gmra.mxu2 %v2391_v58  ;;  %v375_v52 = vpop.f32.mrf.mxu3  ;;  %1179 = vmatmul.bf16.gmra.mxu3 %v2393_v1 }
 0x106   :  { %v230_v10 = vpop.f32.mrf.mxu0  ;;  %v279_v30 = vpop.f32.mrf.mxu1  ;;  %v327_v15 = vadd.f32 %v326_v8, %v2223_v9  ;;  %v376_v22 = vadd.f32 %v375_v52, %v2225_v13 }
 0x107   :  { %v231_v14 = vadd.f32 %v230_v10, %v2219_v3  ;;  %v280_v11 = vadd.f32 %v279_v30, %v2217_v2 }
 0x108   :  { %v502_v39 = vmul.f32 0.2, %v327_v15  ;;  %vm438_vm13 = vcmp.gt.f32.partialorder %v327_v15, 0.0  ;;  %v503_v45 = vmul.f32 0.2, %v376_v22  ;;  %vm439_vm14 = vcmp.gt.f32.partialorder %v376_v22, 0.0 }
 0x109   :  { %vm440_vm11 = vcmp.gt.f32.partialorder %v231_v14, 0.0  ;;  %v504_v12 = vmul.f32 0.2, %v231_v14  ;;  %vm441_vm12 = vcmp.gt.f32.partialorder %v280_v11, 0.0  ;;  %v505_v18 = vmul.f32 0.2, %v280_v11 }
 0x10a   :  { %v566_v50 = vsel %vm438_vm13, %v327_v15, %v502_v39  ;;  %v567_v7 = vsel %vm439_vm14, %v376_v22, %v503_v45 }
 0x10b   :  { %v568_v29 = vsel %vm440_vm11, %v231_v14, %v504_v12  ;;  %v569_v33 = vsel %vm441_vm12, %v280_v11, %v505_v18 }
 0x10c   :  { %v2401_v32 = vpack.c.bf16 %v568_v29, %v564_v23  ;;  %v2403_v35 = vpack.c.bf16 %v569_v33, %v565_v19 }
 0x10d   :  { %v328_v3 = vpop.f32.mrf.mxu2  ;;  %v377_v40 = vpop.f32.mrf.mxu3 }
 0x10e   :  { %v329_v2 = vadd.f32 %v328_v3, %v2223_v9  ;;  %1037 = vmatmul.bf16.gmra.mxu0 %v2401_v32  ;;  %v378_v46 = vadd.f32 %v377_v40, %v2225_v13  ;;  %1086 = vmatmul.bf16.gmra.mxu1 %v2403_v35  ;;  %v2417_v13 = vld [vmem:[%s2611_s4] sm:$0x3] }
 0x10f   :  { %v2421_v31 = vperm.slane %v2417_v13, 0 }
 0x110   :  { %vm442_vm15 = vcmp.gt.f32.partialorder %v329_v2, 0.0  ;;  %v506_v47 = vmul.f32 0.2, %v329_v2  ;;  %vm443_vm0 = vcmp.gt.f32.partialorder %v378_v46, 0.0  ;;  %v507_v48 = vmul.f32 0.2, %v378_v46 }
 0x112   :  { %v570_v54 = vsel %vm442_vm15, %v329_v2, %v506_v47  ;;  %v571_v9 = vsel %vm443_vm0, %v378_v46, %v507_v48 }
 0x113   :  { %v2409_v56 = vpack.c.bf16 %v570_v54, %v566_v50  ;;  %v2411_v51 = vpack.c.bf16 %v571_v9, %v567_v7 }
 0x115   :  { %1135 = vmatmul.bf16.gmra.mxu2 %v2409_v56  ;;  %1184 = vmatmul.bf16.gmra.mxu3 %v2411_v51 }
 0x11b   :  { %v1003_v0 = vpop.f32.mrf.mxu0  ;;  %v1052_v8 = vpop.f32.mrf.mxu1 }
 0x11c   :  { %v1004_v28 = vadd.f32 %v1003_v0, %v2421_v31 }
 0x11e   :  { %v1053_v5 = vadd.f32 %v1052_v8, %v1004_v28  ;;  %1198 = vmatmul.bf16.vlgmr.msra.gmra.mxu0 %v2231_v24  ;;  %1247 = vmatmul.bf16.vlgmr.msra.gmra.mxu1 %v2233_v27 }
 0x123   :  { %v1005_v52 = vpop.f32.mrf.mxu0  ;;  %v1054_v16 = vpop.f32.mrf.mxu1 }
 0x124   :  { %v1006_v10 = vadd.f32 %v1005_v52, %v2421_v31 }
 0x125   :  { %1296 = vmatmul.bf16.vlgmr.msra.gmra.mxu2 %v2241_v41  ;;  %1345 = vmatmul.bf16.vlgmr.msra.gmra.mxu3 %v2243_v44 }
 0x126   :  { %v1055_v14 = vadd.f32 %v1054_v16, %v1006_v10 }
 0x128   :  { %v1101_v30 = vpop.f32.mrf.mxu2  ;;  %v1150_v12 = vpop.f32.mrf.mxu3 }
 0x129   :  { %v1102_v11 = vadd.f32 %v1101_v30, %v1053_v5 }
 0x12b   :  { %v1151_v15 = vadd.f32 %v1150_v12, %v1102_v11  ;;  %v1008_v18 = vpop.f32.mrf.mxu0  ;;  %v1057_v22 = vpop.f32.mrf.mxu1 }
 0x12c   :  { %v1009_v19 = vadd.f32 %v1008_v18, %v2421_v31 }
 0x12d   :  { %v1418_v41 = vmul.f32 0.2, %v1151_v15  ;;  %vm1386_vm1 = vcmp.gt.f32.partialorder %v1151_v15, 0.0 }
 0x12e   :  { %v1058_v24 = vadd.f32 %v1057_v22, %v1009_v19  ;;  %1203 = vmatmul.bf16.gmra.mxu0 %v2251_v60  ;;  %1252 = vmatmul.bf16.gmra.mxu1 %v2253_v63 }
 0x12f   :  { %v2435_v60 = vsel %vm1386_vm1, %v1151_v15, %v1418_v41 }
 0x130   :  { %v1103_v27 = vpop.f32.mrf.mxu2  ;;  %v1152_v29 = vpop.f32.mrf.mxu3 }
 0x131   :  { %v1104_v23 = vadd.f32 %v1103_v27, %v1055_v14 }
 0x133   :  { %v1153_v33 = vadd.f32 %v1152_v29, %v1104_v23  ;;  %v1010_v3 = vpop.f32.mrf.mxu0  ;;  %v1059_v39 = vpop.f32.mrf.mxu1 }
 0x134   :  { %v1011_v44 = vadd.f32 %v1010_v3, %v2421_v31 }
 0x135   :  { %vm1388_vm2 = vcmp.gt.f32.partialorder %v1153_v33, 0.0  ;;  %v1420_v2 = vmul.f32 0.2, %v1153_v33  ;;  %1301 = vmatmul.bf16.gmra.mxu2 %v2261_v17  ;;  %1350 = vmatmul.bf16.gmra.mxu3 %v2263_v20 }
 0x136   :  { %v1060_v40 = vadd.f32 %v1059_v39, %v1011_v44 }
 0x137   :  { %v2437_v63 = vsel %vm1388_vm2, %v1153_v33, %v1420_v2 }
 0x138   :  { %v1106_v45 = vpop.f32.mrf.mxu2  ;;  %v1483_v46 = vpack.c.bf16 %v2437_v63, %v2435_v60  ;;  %v1155_v48 = vpop.f32.mrf.mxu3 }
 0x139   :  { %v1107_v47 = vadd.f32 %v1106_v45, %v1058_v24 }
 0x13b   :  { %v1156_v50 = vadd.f32 %v1155_v48, %v1107_v47  ;;  %v1013_v54 = vpop.f32.mrf.mxu0  ;;  %v1062_v9 = vpop.f32.mrf.mxu1 }
 0x13c   :  { %v1014_v7 = vadd.f32 %v1013_v54, %v2421_v31 }
 0x13d   :  { %v1422_v8 = vmul.f32 0.2, %v1156_v50  ;;  %vm1390_vm3 = vcmp.gt.f32.partialorder %v1156_v50, 0.0 }
 0x13e   :  { %v1063_v0 = vadd.f32 %v1062_v9, %v1014_v7  ;;  %1208 = vmatmul.bf16.gmra.mxu0 %v2271_v38  ;;  %1257 = vmatmul.bf16.gmra.mxu1 %v2273_v42 }
 0x13f   :  { %v2447_v38 = vsel %vm1390_vm3, %v1156_v50, %v1422_v8 }
 0x140   :  { %v1108_v17 = vpop.f32.mrf.mxu2  ;;  %v1157_v28 = vpop.f32.mrf.mxu3 }
 0x141   :  { %v1109_v20 = vadd.f32 %v1108_v17, %v1060_v40 }
 0x143   :  { %v1158_v5 = vadd.f32 %v1157_v28, %v1109_v20  ;;  %v1015_v52 = vpop.f32.mrf.mxu0  ;;  %v1064_v16 = vpop.f32.mrf.mxu1 }
 0x144   :  { %v1016_v10 = vadd.f32 %v1015_v52, %v2421_v31 }
 0x145   :  { %vm1392_vm4 = vcmp.gt.f32.partialorder %v1158_v5, 0.0  ;;  %v1424_v14 = vmul.f32 0.2, %v1158_v5  ;;  %1306 = vmatmul.bf16.gmra.mxu2 %v2281_v57  ;;  %1355 = vmatmul.bf16.gmra.mxu3 %v2283_v61 }
 0x146   :  { %v1065_v30 = vadd.f32 %v1064_v16, %v1016_v10 }
 0x147   :  { %v2449_v42 = vsel %vm1392_vm4, %v1158_v5, %v1424_v14 }
 0x148   :  { %v1111_v11 = vpop.f32.mrf.mxu2  ;;  %v1485_v12 = vpack.c.bf16 %v2449_v42, %v2447_v38  ;;  %v1160_v18 = vpop.f32.mrf.mxu3 }
 0x149   :  { %v1112_v15 = vadd.f32 %v1111_v11, %v1063_v0 }
 0x14b   :  { %v1161_v19 = vadd.f32 %v1160_v18, %v1112_v15  ;;  %v1018_v22 = vpop.f32.mrf.mxu0  ;;  %v1067_v27 = vpop.f32.mrf.mxu1 }
 0x14c   :  { %v1019_v24 = vadd.f32 %v1018_v22, %v2421_v31 }
 0x14d   :  { %v1426_v41 = vmul.f32 0.2, %v1161_v19  ;;  %vm1394_vm5 = vcmp.gt.f32.partialorder %v1161_v19, 0.0 }
 0x14e   :  { %v1068_v23 = vadd.f32 %v1067_v27, %v1019_v24  ;;  %1213 = vmatmul.bf16.gmra.mxu0 %v2291_v25  ;;  %1262 = vmatmul.bf16.gmra.mxu1 %v2293_v34 }
 0x14f   :  { %v2459_v25 = vsel %vm1394_vm5, %v1161_v19, %v1426_v41 }
 0x150   :  { %v1113_v57 = vpop.f32.mrf.mxu2  ;;  %v1162_v29 = vpop.f32.mrf.mxu3 }
 0x151   :  { %v1114_v61 = vadd.f32 %v1113_v57, %v1065_v30 }
 0x153   :  { %v1163_v33 = vadd.f32 %v1162_v29, %v1114_v61  ;;  %v1020_v3 = vpop.f32.mrf.mxu0  ;;  %v1069_v39 = vpop.f32.mrf.mxu1 }
 0x154   :  { %v1021_v44 = vadd.f32 %v1020_v3, %v2421_v31 }
 0x155   :  { %vm1396_vm6 = vcmp.gt.f32.partialorder %v1163_v33, 0.0  ;;  %v1428_v2 = vmul.f32 0.2, %v1163_v33  ;;  %1311 = vmatmul.bf16.gmra.mxu2 %v2301_v55  ;;  %1360 = vmatmul.bf16.gmra.mxu3 %v2303_v59 }
 0x156   :  { %v1070_v40 = vadd.f32 %v1069_v39, %v1021_v44 }
 0x157   :  { %v2461_v34 = vsel %vm1396_vm6, %v1163_v33, %v1428_v2 }
 0x158   :  { %v1116_v45 = vpop.f32.mrf.mxu2  ;;  %v1487_v47 = vpack.c.bf16 %v2461_v34, %v2459_v25  ;;  %v1165_v50 = vpop.f32.mrf.mxu3 }
 0x159   :  { %v1117_v48 = vadd.f32 %v1116_v45, %v1068_v23 }
 0x15b   :  { %v1166_v54 = vadd.f32 %v1165_v50, %v1117_v48  ;;  %v1023_v7 = vpop.f32.mrf.mxu0  ;;  %v1072_v0 = vpop.f32.mrf.mxu1 }
 0x15c   :  { %v1024_v9 = vadd.f32 %v1023_v7, %v2421_v31 }
 0x15d   :  { %v1430_v28 = vmul.f32 0.2, %v1166_v54  ;;  %vm1398_vm7 = vcmp.gt.f32.partialorder %v1166_v54, 0.0 }
 0x15e   :  { %v1073_v17 = vadd.f32 %v1072_v0, %v1024_v9  ;;  %1218 = vmatmul.bf16.gmra.mxu0 %v2311_v26  ;;  %1267 = vmatmul.bf16.gmra.mxu1 %v2313_v36 }
 0x15f   :  { %v2470_v16 = vsel %vm1398_vm7, %v1166_v54, %v1430_v28 }
 0x160   :  { %v1118_v55 = vpop.f32.mrf.mxu2  ;;  %v1167_v20 = vpop.f32.mrf.mxu3 }
 0x161   :  { %v1119_v59 = vadd.f32 %v1118_v55, %v1070_v40 }
 0x163   :  { %v1168_v8 = vadd.f32 %v1167_v20, %v1119_v59  ;;  %v1025_v5 = vpop.f32.mrf.mxu0  ;;  %v1074_v52 = vpop.f32.mrf.mxu1 }
 0x164   :  { %v1026_v15 = vadd.f32 %v1025_v5, %v2421_v31 }
 0x165   :  { %vm1400_vm8 = vcmp.gt.f32.partialorder %v1168_v8, 0.0  ;;  %v1432_v10 = vmul.f32 0.2, %v1168_v8  ;;  %1316 = vmatmul.bf16.gmra.mxu2 %v2321_v62  ;;  %1365 = vmatmul.bf16.gmra.mxu3 %v2323_v4 }
 0x166   :  { %v1075_v62 = vadd.f32 %v1074_v52, %v1026_v15 }
 0x167   :  { %v2472_v14 = vsel %vm1400_vm8, %v1168_v8, %v1432_v10 }
 0x168   :  { %v1121_v26 = vpop.f32.mrf.mxu2  ;;  %v1489_v36 = vpack.c.bf16 %v2472_v14, %v2470_v16  ;;  %v1170_v11 = vpop.f32.mrf.mxu3 }
 0x169   :  { %v1122_v30 = vadd.f32 %v1121_v26, %v1073_v17 }
 0x16b   :  { %v1171_v18 = vadd.f32 %v1170_v11, %v1122_v30  ;;  %v2477_v19 = vpop.f32.mrf.mxu0  ;;  %v2479_v22 = vpop.f32.mrf.mxu1 }
 0x16d   :  { %v1434_v23 = vmul.f32 0.2, %v1171_v18  ;;  %vm1402_vm9 = vcmp.gt.f32.partialorder %v1171_v18, 0.0 }
 0x16e   :  { %1223 = vmatmul.bf16.gmra.mxu0 %v2334_v43  ;;  %1272 = vmatmul.bf16.gmra.mxu1 %v2337_v53 }
 0x16f   :  { %v2487_v33 = vsel %vm1402_vm9, %v1171_v18, %v1434_v23 }
 0x170   :  { %v1123_v4 = vpop.f32.mrf.mxu2  ;;  %v1172_v27 = vpop.f32.mrf.mxu3 }
 0x171   :  { %v1124_v24 = vadd.f32 %v1123_v4, %v1075_v62 }
 0x173   :  { %v1173_v57 = vadd.f32 %v1172_v27, %v1124_v24  ;;  %v1030_v61 = vpop.f32.mrf.mxu0  ;;  %v2483_v29 = vpop.f32.mrf.mxu1 }
 0x174   :  { %v1031_v62 = vadd.f32 %v1030_v61, %v2421_v31 }
 0x175   :  { %vm1404_vm10 = vcmp.gt.f32.partialorder %v1173_v57, 0.0  ;;  %v1436_v41 = vmul.f32 0.2, %v1173_v57  ;;  %1321 = vmatmul.bf16.gmra.mxu2 %v2351_v37  ;;  %1370 = vmatmul.bf16.gmra.mxu3 %v2354_v49 }
 0x177   :  { %v2489_v43 = vsel %vm1404_vm10, %v1173_v57, %v1436_v41 }
 0x178   :  { %v2491_v53 = vpop.f32.mrf.mxu2  ;;  %v1491_v3 = vpack.c.bf16 %v2489_v43, %v2487_v33  ;;  %v2495_v44 = vpop.f32.mrf.mxu3 }
 0x17b   :  { %v1033_v39 = vpop.f32.mrf.mxu0  ;;  %v1082_v2 = vpop.f32.mrf.mxu1 }
 0x17c   :  { %v1034_v52 = vadd.f32 %v1033_v39, %v2421_v31  ;;  %v1029_v39 = vadd.f32 %v2477_v19, %v2421_v31 }
 0x17e   :  { %1228 = vmatmul.bf16.gmra.mxu0 %v2374_v21  ;;  %1277 = vmatmul.bf16.gmra.mxu1 %v2376_v6 }
 0x180   :  { %v1128_v37 = vpop.f32.mrf.mxu2  ;;  %v2499_v40 = vpop.f32.mrf.mxu3 }
 0x183   :  { %v1035_v49 = vpop.f32.mrf.mxu0  ;;  %v1084_v45 = vpop.f32.mrf.mxu1 }
 0x185   :  { %1326 = vmatmul.bf16.gmra.mxu2 %v2391_v58  ;;  %1375 = vmatmul.bf16.gmra.mxu3 %v2393_v1  ;;  %v2509_v1 = vperm.slane %v2417_v13, 1  ;;  %v1083_v13 = vadd.f32 %v1082_v2, %v1034_v52 }
 0x188   :  { %v1131_v48 = vpop.f32.mrf.mxu2  ;;  %v1180_v50 = vpop.f32.mrf.mxu3 }
 0x189   :  { %v1132_v4 = vadd.f32 %v1131_v48, %v1083_v13 }
 0x18b   :  { %v1038_v54 = vpop.f32.mrf.mxu0  ;;  %v1087_v7 = vpop.f32.mrf.mxu1 }
 0x18c   :  { %v1039_v17 = vadd.f32 %v1038_v54, %v2421_v31  ;;  %v1080_v54 = vadd.f32 %v2483_v29, %v1031_v62 }
 0x18e   :  { %1233 = vmatmul.bf16.gmra.mxu0 %v2401_v32  ;;  %1282 = vmatmul.bf16.gmra.mxu1 %v2403_v35  ;;  %v1088_v55 = vadd.f32 %v1087_v7, %v1039_v17  ;;  %v1036_v32 = vadd.f32 %v1035_v49, %v2421_v31  ;;  %v1181_v7 = vadd.f32 %v1180_v50, %v1132_v4 }
 0x18f   :  { %v1129_v17 = vadd.f32 %v1128_v37, %v1080_v54 }
 0x190   :  { %v1133_v21 = vpop.f32.mrf.mxu2  ;;  %v1182_v9 = vpop.f32.mrf.mxu3  ;;  %v1085_v10 = vadd.f32 %v1084_v45, %v1036_v32  ;;  %v1442_v19 = vmul.f32 0.2, %v1181_v7  ;;  %vm1410_vm14 = vcmp.gt.f32.partialorder %v1181_v7, 0.0 }
 0x192   :  { %v1134_v11 = vadd.f32 %v1133_v21, %v1085_v10  ;;  %v1474_v37 = vsel %vm1410_vm14, %v1181_v7, %v1442_v19 }
 0x193   :  { %v1040_v6 = vpop.f32.mrf.mxu0  ;;  %v1089_v0 = vpop.f32.mrf.mxu1 }
 0x194   :  { %v1041_v35 = vadd.f32 %v1040_v6, %v2421_v31  ;;  %v1183_v49 = vadd.f32 %v1182_v9, %v1134_v11 }
 0x195   :  { %1331 = vmatmul.bf16.gmra.mxu2 %v2409_v56  ;;  %1380 = vmatmul.bf16.gmra.mxu3 %v2411_v51 }
 0x196   :  { %v1090_v51 = vadd.f32 %v1089_v0, %v1041_v35  ;;  %v1078_v0 = vadd.f32 %v2479_v22, %v1029_v39  ;;  %vm1412_vm13 = vcmp.gt.f32.partialorder %v1183_v49, 0.0  ;;  %v1178_v35 = vadd.f32 %v2499_v40, %v1129_v17 }
 0x198   :  { %v1136_v58 = vpop.f32.mrf.mxu2  ;;  %v1185_v59 = vpop.f32.mrf.mxu3  ;;  %v1127_v31 = vadd.f32 %v2491_v53, %v1078_v0  ;;  %v1440_v52 = vmul.f32 0.2, %v1178_v35  ;;  %vm1408_vm15 = vcmp.gt.f32.partialorder %v1178_v35, 0.0 }
 0x199   :  { %v1137_v20 = vadd.f32 %v1136_v58, %v1088_v55  ;;  %v1444_v58 = vmul.f32 0.2, %v1183_v49 }
 0x19a   :  { %v1176_v22 = vadd.f32 %v2495_v44, %v1127_v31  ;;  %v1472_v44 = vsel %vm1408_vm15, %v1178_v35, %v1440_v52 }
 0x19b   :  { %v1199_v28 = vpop.f32.mrf.mxu0  ;;  %v1248_v5 = vpop.f32.mrf.mxu1  ;;  %v1186_v26 = vadd.f32 %v1185_v59, %v1137_v20  ;;  %v1476_v20 = vsel %vm1412_vm13, %v1183_v49, %v1444_v58 }
 0x19c   :  { %v1200_v8 = vadd.f32 %v1199_v28, %v2509_v1  ;;  %v1438_v53 = vmul.f32 0.2, %v1176_v22  ;;  %vm1406_vm0 = vcmp.gt.f32.partialorder %v1176_v22, 0.0 }
 0x19d   :  { %v1446_v24 = vmul.f32 0.2, %v1186_v26  ;;  %vm1414_vm11 = vcmp.gt.f32.partialorder %v1186_v26, 0.0 }
 0x19e   :  { %v1249_v56 = vadd.f32 %v1248_v5, %v1200_v8  ;;  %v1495_v5 = vpack.c.bf16 %v1476_v20, %v1474_v37 }
 0x19f   :  { %v1478_v21 = vsel %vm1414_vm11, %v1186_v26, %v1446_v24 }
 0x1a0   :  { %v1138_v30 = vpop.f32.mrf.mxu2  ;;  %v1187_v18 = vpop.f32.mrf.mxu3 }
 0x1a1   :  { %v1139_v15 = vadd.f32 %v1138_v30, %v1090_v51 }
 0x1a3   :  { %v1188_v27 = vadd.f32 %v1187_v18, %v1139_v15  ;;  %v1201_v23 = vpop.f32.mrf.mxu0  ;;  %v1250_v41 = vpop.f32.mrf.mxu1  ;;  %v1470_v18 = vsel %vm1406_vm0, %v1176_v22, %v1438_v53 }
 0x1a4   :  { %v1202_v57 = vadd.f32 %v1201_v23, %v2509_v1 }
 0x1a5   :  { %vm1416_vm12 = vcmp.gt.f32.partialorder %v1188_v27, 0.0  ;;  %v1448_v45 = vmul.f32 0.2, %v1188_v27 }
 0x1a6   :  { %v1251_v2 = vadd.f32 %v1250_v41, %v1202_v57 }
 0x1a7   :  { %v1480_v61 = vsel %vm1416_vm12, %v1188_v27, %v1448_v45  ;;  %v1493_v27 = vpack.c.bf16 %v1472_v44, %v1470_v18 }
 0x1a8   :  { %v1497_v48 = vpack.c.bf16 %v1480_v61, %v1478_v21  ;;  %v1297_v6 = vpop.f32.mrf.mxu2  ;;  %v1346_v59 = vpop.f32.mrf.mxu3 }
 0x1a9   :  { %v1298_v55 = vadd.f32 %v1297_v6, %v1249_v56 }
 0x1aa   :  { %1507 = vmatpush.bf16.xpose.msrb.mxu0 %v1497_v48 }
 0x1ab   :  { %v1347_v9 = vadd.f32 %v1346_v59, %v1298_v55  ;;  %v1204_v32 = vpop.f32.mrf.mxu0  ;;  %v1253_v50 = vpop.f32.mrf.mxu1 }
 0x1ac   :  { %v1205_v29 = vadd.f32 %v1204_v32, %v2509_v1 }
 0x1ad   :  { %v1419_v51 = vmul.f32 0.2, %v1347_v9  ;;  %vm1387_vm1 = vcmp.gt.f32.partialorder %v1347_v9, 0.0 }
 0x1ae   :  { %v1254_v28 = vadd.f32 %v1253_v50, %v1205_v29 }
 0x1af   :  { %v2526_v62 = vsel %vm1387_vm1, %v1347_v9, %v1419_v51 }
 0x1b0   :  { %v1299_v8 = vpop.f32.mrf.mxu2  ;;  %v1348_v10 = vpop.f32.mrf.mxu3 }
 0x1b1   :  { %v1300_v56 = vadd.f32 %v1299_v8, %v1251_v2 }
 0x1b2   :  { %1508 = vmatpush.bf16.xpose.msrb.mxu0 %v1495_v5 }
 0x1b3   :  { %v1349_v26 = vadd.f32 %v1348_v10, %v1300_v56  ;;  %v1206_v30 = vpop.f32.mrf.mxu0  ;;  %v1255_v13 = vpop.f32.mrf.mxu1 }
 0x1b4   :  { %v1207_v40 = vadd.f32 %v1206_v30, %v2509_v1 }
 0x1b5   :  { %vm1389_vm2 = vcmp.gt.f32.partialorder %v1349_v26, 0.0  ;;  %v1421_v11 = vmul.f32 0.2, %v1349_v26 }
 0x1b6   :  { %v1256_v15 = vadd.f32 %v1255_v13, %v1207_v40 }
 0x1b7   :  { %v2528_v4 = vsel %vm1389_vm2, %v1349_v26, %v1421_v11 }
 0x1b8   :  { %v1302_v24 = vpop.f32.mrf.mxu2  ;;  %v1484_v23 = vpack.c.bf16 %v2528_v4, %v2526_v62  ;;  %v1351_v41 = vpop.f32.mrf.mxu3 }
 0x1b9   :  { %v1303_v57 = vadd.f32 %v1302_v24, %v1254_v28 }
 0x1ba   :  { %1509 = vmatpush.bf16.xpose.msrb.mxu0 %v1493_v27 }
 0x1bb   :  { %v1352_v39 = vadd.f32 %v1351_v41, %v1303_v57  ;;  %v1209_v49 = vpop.f32.mrf.mxu0  ;;  %v1258_v2 = vpop.f32.mrf.mxu1 }
 0x1bc   :  { %v1210_v45 = vadd.f32 %v1209_v49, %v2509_v1 }
 0x1bd   :  { %v1423_v48 = vmul.f32 0.2, %v1352_v39  ;;  %vm1391_vm3 = vcmp.gt.f32.partialorder %v1352_v39, 0.0 }
 0x1be   :  { %v1259_v54 = vadd.f32 %v1258_v2, %v1210_v45 }
 0x1bf   :  { %v2537_v31 = vsel %vm1391_vm3, %v1352_v39, %v1423_v48 }
 0x1c0   :  { %v1304_v7 = vpop.f32.mrf.mxu2  ;;  %v1353_v61 = vpop.f32.mrf.mxu3 }
 0x1c1   :  { %v1305_v21 = vadd.f32 %v1304_v7, %v1256_v15 }
 0x1c2   :  { %1510 = vmatpush.bf16.xpose.msrb.mxu0 %v1491_v3 }
 0x1c3   :  { %v1354_v6 = vadd.f32 %v1353_v61, %v1305_v21  ;;  %v1211_v0 = vpop.f32.mrf.mxu0  ;;  %v1260_v58 = vpop.f32.mrf.mxu1 }
 0x1c4   :  { %v1212_v17 = vadd.f32 %v1211_v0, %v2509_v1 }
 0x1c5   :  { %vm1393_vm4 = vcmp.gt.f32.partialorder %v1354_v6, 0.0  ;;  %v1425_v55 = vmul.f32 0.2, %v1354_v6 }
 0x1c6   :  { %v1261_v59 = vadd.f32 %v1260_v58, %v1212_v17 }
 0x1c7   :  { %v2539_v19 = vsel %vm1393_vm4, %v1354_v6, %v1425_v55 }
 0x1c8   :  { %v1307_v9 = vpop.f32.mrf.mxu2  ;;  %v1486_v32 = vpack.c.bf16 %v2539_v19, %v2537_v31  ;;  %v1356_v43 = vpop.f32.mrf.mxu3 }
 0x1c9   :  { %v1308_v33 = vadd.f32 %v1307_v9, %v1259_v54 }
 0x1ca   :  { %1511 = vmatpush.bf16.xpose.msrb.mxu0 %v1489_v36 }
 0x1cb   :  { %v1357_v3 = vadd.f32 %v1356_v43, %v1308_v33  ;;  %v1214_v29 = vpop.f32.mrf.mxu0  ;;  %v1263_v35 = vpop.f32.mrf.mxu1 }
 0x1cc   :  { %v1215_v50 = vadd.f32 %v1214_v29, %v2509_v1 }
 0x1cd   :  { %v1427_v8 = vmul.f32 0.2, %v1357_v3  ;;  %vm1395_vm5 = vcmp.gt.f32.partialorder %v1357_v3, 0.0 }
 0x1ce   :  { %v1264_v20 = vadd.f32 %v1263_v35, %v1215_v50 }
 0x1cf   :  { %v2551_v10 = vsel %vm1395_vm5, %v1357_v3, %v1427_v8 }
 0x1d0   :  { %v1309_v28 = vpop.f32.mrf.mxu2  ;;  %v1358_v37 = vpop.f32.mrf.mxu3 }
 0x1d1   :  { %v1310_v22 = vadd.f32 %v1309_v28, %v1261_v59 }
 0x1d2   :  { %1512 = vmatpush.bf16.xpose.msrb.mxu0 %v1487_v47 }
 0x1d3   :  { %v1359_v5 = vadd.f32 %v1358_v37, %v1310_v22  ;;  %v1216_v52 = vpop.f32.mrf.mxu0  ;;  %v1265_v14 = vpop.f32.mrf.mxu1 }
 0x1d4   :  { %v1217_v16 = vadd.f32 %v1216_v52, %v2509_v1 }
 0x1d5   :  { %vm1397_vm6 = vcmp.gt.f32.partialorder %v1359_v5, 0.0  ;;  %v1429_v36 = vmul.f32 0.2, %v1359_v5 }
 0x1d6   :  { %v1266_v56 = vadd.f32 %v1265_v14, %v1217_v16 }
 0x1d7   :  { %v2553_v53 = vsel %vm1397_vm6, %v1359_v5, %v1429_v36 }
 0x1d8   :  { %v1312_v51 = vpop.f32.mrf.mxu2  ;;  %v1488_v26 = vpack.c.bf16 %v2553_v53, %v2551_v10  ;;  %v1361_v34 = vpop.f32.mrf.mxu3 }
 0x1d9   :  { %v1313_v25 = vadd.f32 %v1312_v51, %v1264_v20 }
 0x1da   :  { %1513 = vmatpush.bf16.xpose.msrb.mxu0 %v1485_v12 }
 0x1db   :  { %v1362_v47 = vadd.f32 %v1361_v34, %v1313_v25  ;;  %v1219_v30 = vpop.f32.mrf.mxu0  ;;  %v1268_v13 = vpop.f32.mrf.mxu1 }
 0x1dc   :  { %v1220_v40 = vadd.f32 %v1219_v30, %v2509_v1 }
 0x1dd   :  { %v1431_v24 = vmul.f32 0.2, %v1362_v47  ;;  %vm1399_vm7 = vcmp.gt.f32.partialorder %v1362_v47, 0.0 }
 0x1de   :  { %v1269_v11 = vadd.f32 %v1268_v13, %v1220_v40 }
 0x1df   :  { %v2565_v39 = vsel %vm1399_vm7, %v1362_v47, %v1431_v24 }
 0x1e0   :  { %v1314_v44 = vpop.f32.mrf.mxu2  ;;  %v1363_v18 = vpop.f32.mrf.mxu3 }
 0x1e1   :  { %v1315_v15 = vadd.f32 %v1314_v44, %v1266_v56 }
 0x1e2   :  { %1514 = vmatpush.bf16.xpose.msrb.mxu0 %v1483_v46 }
 0x1e3   :  { %v1364_v27 = vadd.f32 %v1363_v18, %v1315_v15  ;;  %v1221_v57 = vpop.f32.mrf.mxu0  ;;  %v1270_v42 = vpop.f32.mrf.mxu1 }
 0x1e4   :  { %v1222_v38 = vadd.f32 %v1221_v57, %v2509_v1 }
 0x1e5   :  { %vm1401_vm8 = vcmp.gt.f32.partialorder %v1364_v27, 0.0  ;;  %v1433_v12 = vmul.f32 0.2, %v1364_v27 }
 0x1e6   :  { %v1271_v41 = vadd.f32 %v1270_v42, %v1222_v38 }
 0x1e7   :  { %v2567_v49 = vsel %vm1401_vm8, %v1364_v27, %v1433_v12 }
 0x1e8   :  { %v1317_v45 = vpop.f32.mrf.mxu2  ;;  %v1490_v2 = vpack.c.bf16 %v2567_v49, %v2565_v39  ;;  %v1366_v63 = vpop.f32.mrf.mxu3  ;;  %v1500_v39 = vstv %s2613_s6 }
 0x1e9   :  { %v1318_v60 = vadd.f32 %v1317_v45, %v1269_v11 }
 0x1eb   :  { %v1367_v46 = vadd.f32 %v1366_v63, %v1318_v60  ;;  %v1224_v54 = vpop.f32.mrf.mxu0  ;;  %v1273_v7 = vpop.f32.mrf.mxu1 }
 0x1ec   :  { %v1225_v63 = vadd.f32 %v1224_v54, %v2509_v1 }
 0x1ed   :  { %v1435_v6 = vmul.f32 0.2, %v1367_v46  ;;  %vm1403_vm9 = vcmp.gt.f32.partialorder %v1367_v46, 0.0 }
 0x1ef   :  { %v2571_v59 = vsel %vm1403_vm9, %v1367_v46, %v1435_v6 }
 0x1f0   :  { %v1319_v21 = vpop.f32.mrf.mxu2  ;;  %v1368_v48 = vpop.f32.mrf.mxu3 }
 0x1f1   :  { %v1320_v61 = vadd.f32 %v1319_v21, %v1271_v41 }
 0x1f3   :  { %v1369_v0 = vadd.f32 %v1368_v48, %v1320_v61  ;;  %v1226_v17 = vpop.f32.mrf.mxu0  ;;  %v1275_v55 = vpop.f32.mrf.mxu1 }
 0x1f4   :  { %v1227_v12 = vadd.f32 %v1226_v17, %v2509_v1 }
 0x1f5   :  { %vm1405_vm10 = vcmp.gt.f32.partialorder %v1369_v0, 0.0  ;;  %v1437_v58 = vmul.f32 0.2, %v1369_v0 }
 0x1f6   :  { %v1276_v61 = vadd.f32 %v1275_v55, %v1227_v12 }
 0x1f7   :  { %v2573_v9 = vsel %vm1405_vm10, %v1369_v0, %v1437_v58 }
 0x1f8   :  { %v1322_v33 = vpop.f32.mrf.mxu2  ;;  %v1492_v43 = vpack.c.bf16 %v2573_v9, %v2571_v59  ;;  %v1371_v3 = vpop.f32.mrf.mxu3 }
 0x1fb   :  { %v1229_v29 = vpop.f32.mrf.mxu0  ;;  %v1278_v50 = vpop.f32.mrf.mxu1 }
 0x1fc   :  { %v1230_v13 = vadd.f32 %v1229_v29, %v2509_v1  ;;  %v1274_v29 = vadd.f32 %v1273_v7, %v1225_v63  ;;  %v1482_v7 = vld [vmem:[%s2612_s5] sm:$0x3] }
 0x1fd   :  { %1502 = vst [vmem:[#allocation1] ss:$9 sm:$0xff] %v1482_v7 }
 0x1fe   :  { %v1279_v27 = vadd.f32 %v1278_v50, %v1230_v13  ;;  %v1323_v17 = vadd.f32 %v1322_v33, %v1274_v29 }
 0x200   :  { %v1324_v35 = vpop.f32.mrf.mxu2  ;;  %v1373_v20 = vpop.f32.mrf.mxu3 }
 0x201   :  { %v1325_v50 = vadd.f32 %v1324_v35, %v1276_v61 }
 0x203   :  { %v1231_v28 = vpop.f32.mrf.mxu0  ;;  %v1280_v8 = vpop.f32.mrf.mxu1 }
 0x204   :  { %v1232_v47 = vadd.f32 %v1231_v28, %v2509_v1  ;;  %v1503_v33 = vld [vmem:[#allocation1] sm:$0xff] }
 0x205   :  { %1515 = vmatmul.bf16.vlgmr.msrb.gmra.mxu0 %v1503_v33 }
 0x206   :  { %v1281_v44 = vadd.f32 %v1280_v8, %v1232_v47  ;;  %v1374_v8 = vadd.f32 %v1373_v20, %v1325_v50 }
 0x208   :  { %v1327_v22 = vpop.f32.mrf.mxu2  ;;  %v1376_v37 = vpop.f32.mrf.mxu3  ;;  %vm1409_vm15 = vcmp.gt.f32.partialorder %v1374_v8, 0.0 }
 0x209   :  { %v1328_v41 = vadd.f32 %v1327_v22, %v1279_v27 }
 0x20b   :  { %v1234_v5 = vpop.f32.mrf.mxu0  ;;  %v1283_v14 = vpop.f32.mrf.mxu1  ;;  %v1377_v48 = vadd.f32 %v1376_v37, %v1328_v41 }
 0x20c   :  { %v1235_v36 = vadd.f32 %v1234_v5, %v2509_v1 }
 0x20d   :  { %v1443_v22 = vmul.f32 0.2, %v1377_v48  ;;  %vm1411_vm14 = vcmp.gt.f32.partialorder %v1377_v48, 0.0 }
 0x20e   :  { %v1284_v25 = vadd.f32 %v1283_v14, %v1235_v36 }
 0x210   :  { %v1329_v52 = vpop.f32.mrf.mxu2  ;;  %v1378_v16 = vpop.f32.mrf.mxu3 }
 0x211   :  { %v1330_v57 = vadd.f32 %v1329_v52, %v1281_v44  ;;  %v1372_v52 = vadd.f32 %v1371_v3, %v1323_v17  ;;  %v1504_v3 = vld [vmem:[#allocation1 + $0x9] sm:$0xff] }
 0x213   :  { %v1236_v56 = vpop.f32.mrf.mxu0  ;;  %v1285_v11 = vpop.f32.mrf.mxu1  ;;  %v1379_v46 = vadd.f32 %v1378_v16, %v1330_v57  ;;  %v1441_v16 = vmul.f32 0.2, %v1374_v8  ;;  %v1439_v55 = vmul.f32 0.2, %v1372_v52  ;;  %vm1407_vm0 = vcmp.gt.f32.partialorder %v1372_v52, 0.0 }
 0x214   :  { %v1237_v30 = vadd.f32 %v1236_v56, %v2509_v1  ;;  %v1475_v1 = vsel %vm1411_vm14, %v1377_v48, %v1443_v22 }
 0x215   :  { %v1445_v28 = vmul.f32 0.2, %v1379_v46  ;;  %vm1413_vm13 = vcmp.gt.f32.partialorder %v1379_v46, 0.0  ;;  %v1473_v37 = vsel %vm1409_vm15, %v1374_v8, %v1441_v16  ;;  %v1471_v14 = vsel %vm1407_vm0, %v1372_v52, %v1439_v55 }
 0x216   :  { %v1286_v15 = vadd.f32 %v1285_v11, %v1237_v30  ;;  %v1494_v35 = vpack.c.bf16 %v1473_v37, %v1471_v14 }
 0x217   :  { %v1477_v5 = vsel %vm1413_vm13, %v1379_v46, %v1445_v28 }
 0x218   :  { %v1332_v51 = vpop.f32.mrf.mxu2  ;;  %v1381_v34 = vpop.f32.mrf.mxu3  ;;  %v1496_v54 = vpack.c.bf16 %v1477_v5, %v1475_v1 }
 0x219   :  { %v1333_v40 = vadd.f32 %v1332_v51, %v1284_v25 }
 0x21b   :  { %v1382_v18 = vadd.f32 %v1381_v34, %v1333_v40 }
 0x21d   :  { %v1447_v45 = vmul.f32 0.2, %v1382_v18  ;;  %vm1415_vm11 = vcmp.gt.f32.partialorder %v1382_v18, 0.0 }
 0x21f   :  { %v1479_v6 = vsel %vm1415_vm11, %v1382_v18, %v1447_v45 }
 0x220   :  { %v1334_v24 = vpop.f32.mrf.mxu2  ;;  %v1383_v42 = vpop.f32.mrf.mxu3 }
 0x221   :  { %v1335_v38 = vadd.f32 %v1334_v24, %v1286_v15 }
 0x223   :  { %v1384_v60 = vadd.f32 %v1383_v42, %v1335_v38 }
 0x225   :  { %vm1417_vm12 = vcmp.gt.f32.partialorder %v1384_v60, 0.0  ;;  %v1449_v21 = vmul.f32 0.2, %v1384_v60 }
 0x227   :  { %v1481_v0 = vsel %vm1417_vm12, %v1384_v60, %v1449_v21 }
 0x228   :  { %v1498_v58 = vpack.c.bf16 %v1481_v0, %v1479_v6 }
 0x22a   :  { %1520 = vmatpush.bf16.xpose.msrb.mxu1 %v1498_v58 }
 0x232   :  { %1521 = vmatpush.bf16.xpose.msrb.mxu1 %v1496_v54 }
 0x23a   :  { %1522 = vmatpush.bf16.xpose.msrb.mxu1 %v1494_v35 }
 0x242   :  { %1523 = vmatpush.bf16.xpose.msrb.mxu1 %v1492_v43 }
 0x24a   :  { %1524 = vmatpush.bf16.xpose.msrb.mxu1 %v1490_v2 }
 0x252   :  { %1525 = vmatpush.bf16.xpose.msrb.mxu1 %v1488_v26 }
 0x25a   :  { %1526 = vmatpush.bf16.xpose.msrb.mxu1 %v1486_v32 }
 0x262   :  { %1527 = vmatpush.bf16.xpose.msrb.mxu1 %v1484_v23 }
 0x269   :  { %1528 = vmatmul.bf16.vlgmr.msrb.gmra.mxu1 %v1504_v3 }
 0x282   :  { %v1516_v59 = vpop.f32.mrf.mxu0 }
 0x283   :  { %v1517_v49 = vadd.f32 %v1516_v59, %v1500_v39 }
 0x28a   :  { %v1518_v9 = vpop.f32.mrf.mxu0 }
 0x2e6   :  { %v1529_v2 = vpop.f32.mrf.mxu1 }
 0x2e7   :  { %v1530_v10 = vadd.f32 %v1529_v2, %v1517_v49 }
 0x2e9   :  { %v1922_v53 = vmul.f32 -1.442695, %v1530_v10 }
 0x2eb   :  { %2007 = vpow2.f32 %v1922_v53 }
 0x2ee   :  { %v1531_v26 = vpop.f32.mrf.mxu1 }
 0x2f1   :  { %v2008_v31 = vpop.eup %2007 }
 0x2f2   :  { %v1536_v19 = vadd.f32 1.0, %v2008_v31 }
 0x2f4   :  { %2009 = vrcp.f32 %v1536_v19  ;;  %v1548_v23 = vand.u32 2147483648, %v1536_v19  ;;  %v1546_v20 = vand.u32 2147483647, %v1536_v19  ;;  %vm1542_vm2 = vweird.f32 %v1536_v19 }
 0x2f6   :  { %v1549_v56 = vor.u32 1.1754944e-38, %v1548_v23  ;;  %vm1547_vm4 = vcmp.eq.f32.partialorder %v1546_v20, 8.507059e+37 }
 0x2fa   :  { %v2010_v32 = vpop.eup %2009 }
 0x2fb   :  { %v1538_v62 = vmul.f32 %v2010_v32, %v1536_v19  ;;  %vm1543_vm1 = vweird.f32 %v2010_v32 }
 0x2fc   :  { %vm1544_vm3 = vmor %vm1542_vm2, %vm1543_vm1 }
 0x2fd   :  { %v1539_v4 = vsub.f32 1.0, %v1538_v62 }
 0x2ff   :  { %v1540_v43 = vmul.f32 %v2010_v32, %v1539_v4 }
 0x301   :  { %v1541_v36 = vadd.f32 %v2010_v32, %v1540_v43 }
 0x303   :  { %v1545_v51 = vsel %vm1544_vm3, %v2010_v32, %v1541_v36 }
 0x304   :  { %v1550_v25 = vsel %vm1547_vm4, %v1549_v56, %v1545_v51 }
 0x305   :  { %1552 = vst [vmem:[#allocation6] sm:$0x1] %v1550_v25 }
 0x306   :  { %1563 = dma.vmem_to_hbm [thread:$0]  %s1559_s12, 16, %s1561_s3, [#allocation5]  }
 0x307   :  { %2061 = dma.done.wait [#allocation5], 16  }
 0x308   :  { %2062 = vsyncadd [#allocation5], 4294967280 }
 0x309   :  { %1568 = vsyncpa [#allocation4], 1 }
 0x30a   :  { %1569 = vsyncpa [#allocation5], 1 }

</bundles_post_ra>
